<compile_context>
chip_gen: v7x
topology: tpu7x:2x2x1
jax: 0.10.0
libtpu: 0.0.40
codegen_flags: <defaults>
</compile_context>

<pallas_src>
import math
import jax
import jax.numpy as jnp
from jax.experimental import pallas as pl

# ----------------------------- model config ---------------------------------
N_LAYERS = 2
N_HEAD   = 2
D_K      = 16
D_V      = 16
D_MODEL  = 32
D_INNER  = 64
EPS      = 1e-6

B = 2       # batch
S = 8       # sequence length
M = B * S   # batch folded into matmul M dimension
LANES = 128

# ---- bf16 weight-slab row layout (each param padded to 128 lanes) ----------
W_OFF_QKV = 0                            # (D_MODEL, 3*H*D_K)  rows  0..31
W_OFF_WO  = W_OFF_QKV + D_MODEL          # (H*D_V,  D_MODEL)   rows 32..63
W_OFF_W1  = W_OFF_WO + N_HEAD * D_V      # (D_MODEL, D_INNER)  rows 64..95
W_OFF_W2  = W_OFF_W1 + D_MODEL           # (D_INNER, D_MODEL)  rows 96..159
W_LAYER_STRIDE = W_OFF_W2 + D_INNER      # 160  (multiple of 16 -> bf16 tiles)
W_ROWS = N_LAYERS * W_LAYER_STRIDE       # 320

# ---- f32 vector-slab row layout (LN params + biases) ------------------------
V_OFF_LN0 = 0                            # (2, D_MODEL)
V_LAYER_BASE = 8
V_OFF_LNA = 0                            # (2, D_MODEL)
V_OFF_B1  = 8                            # (1, D_INNER)
V_OFF_B2  = 16                           # (1, D_MODEL)
V_OFF_LNF = 24                           # (2, D_MODEL)
V_LAYER_STRIDE = 32
V_ROWS = V_LAYER_BASE + N_LAYERS * V_LAYER_STRIDE   # 72


# ------------------------------ Pallas kernel -------------------------------
def _layer_norm(x, gb):
    # x: (M, D) f32, gb: (2, D) with row 0 = gamma, row 1 = beta.
    # Biased variance, matching torch.nn.LayerNorm.
    mu = jnp.mean(x, axis=-1, keepdims=True)
    var = jnp.mean((x - mu) ** 2, axis=-1, keepdims=True)
    return (x - mu) * jax.lax.rsqrt(var + EPS) * gb[0:1, :] + gb[1:2, :]


def encoder_kernel(x_ref, w_ref, v_ref, out_ref):
    # Single invocation (no grid). Layers statically unrolled.
    scale = 1.0 / math.sqrt(D_K)
    bf16 = jnp.bfloat16

    x = _layer_norm(x_ref[...], v_ref[V_OFF_LN0:V_OFF_LN0 + 2, 0:D_MODEL])  # (M,D)

    for l in range(N_LAYERS):
        wb = l * W_LAYER_STRIDE
        vb = V_LAYER_BASE + l * V_LAYER_STRIDE
        xb = x.astype(bf16)

        # ---- fused lane-dense Q/K/V projection: (16,32) @ (32,96) ----------
        w_qkv = w_ref[wb + W_OFF_QKV: wb + W_OFF_QKV + D_MODEL, 0:3 * N_HEAD * D_K]
        qkv = jnp.dot(xb, w_qkv, preferred_element_type=jnp.float32)   # (M, 96) f32

        # ---- per-head attention (batched over batch); head-sum folded into
        #      the output-projection accumulator --------------------------------
        attn = jnp.zeros((M, D_MODEL), jnp.float32)
        for h in range(N_HEAD):
            q = qkv[:, h * D_K:(h + 1) * D_K].reshape(B, S, D_K)
            k = qkv[:, N_HEAD * D_K + h * D_K: N_HEAD * D_K + (h + 1) * D_K].reshape(B, S, D_K)
            v = qkv[:, 2 * N_HEAD * D_K + h * D_V: 2 * N_HEAD * D_K + (h + 1) * D_V].reshape(B, S, D_V)

            s = jnp.einsum("bqd,bkd->bqk", q.astype(bf16), k.astype(bf16),
                           preferred_element_type=jnp.float32) * scale   # (B,S,S)
            s = s - jnp.max(s, axis=-1, keepdims=True)
            p = jnp.exp(s)
            p = p * pl.reciprocal(jnp.sum(p, axis=-1, keepdims=True), approx=True)
            o = jnp.einsum("bqk,bkd->bqd", p.astype(bf16), v.astype(bf16),
                           preferred_element_type=jnp.float32)           # (B,S,dv)

            wo_h = w_ref[wb + W_OFF_WO + h * D_V: wb + W_OFF_WO + (h + 1) * D_V, 0:D_MODEL]
            attn = attn + jnp.dot(o.reshape(M, D_V).astype(bf16), wo_h,
                                  preferred_element_type=jnp.float32)    # (M, D)

        x = _layer_norm(attn + x, v_ref[vb + V_OFF_LNA: vb + V_OFF_LNA + 2, 0:D_MODEL])

        # ---- position-wise feed forward -------------------------------------
        w1 = w_ref[wb + W_OFF_W1: wb + W_OFF_W1 + D_MODEL, 0:D_INNER]
        w2 = w_ref[wb + W_OFF_W2: wb + W_OFF_W2 + D_INNER, 0:D_MODEL]
        b1 = v_ref[vb + V_OFF_B1: vb + V_OFF_B1 + 1, 0:D_INNER]
        b2 = v_ref[vb + V_OFF_B2: vb + V_OFF_B2 + 1, 0:D_MODEL]

        h1 = jnp.maximum(
            jnp.dot(x.astype(bf16), w1, preferred_element_type=jnp.float32) + b1, 0.0)
        y = jnp.dot(h1.astype(bf16), w2, preferred_element_type=jnp.float32) + b2 + x
        x = _layer_norm(y, v_ref[vb + V_OFF_LNF: vb + V_OFF_LNF + 2, 0:D_MODEL])

    out_ref[...] = x


# --------------------- one-time wrapper-side parameter packing ---------------
def pack_params(params):
    """Pack all Encoder parameters into (bf16 weight slab, f32 vector slab).

    Done once at parameter-load time (NOT per forward call)."""
    (ln0, wq, wk, wv, wo, lnA, w1, b1, w2, b2, lnF) = params
    assert D_K == D_V, "fused QKV packing assumes d_k == d_v"

    # fused QKV weight, lane-dense: (L, D_MODEL, 3*H*d_k), col order [Q | K | V]
    wqkv = jnp.concatenate([wq, wk, wv], axis=-1)          # (L, 32, 96)

    w_slab = jnp.zeros((W_ROWS, LANES), jnp.float32)
    for l in range(N_LAYERS):
        base = l * W_LAYER_STRIDE
        w_slab = w_slab.at[base + W_OFF_QKV: base + W_OFF_QKV + D_MODEL,
                           0:3 * N_HEAD * D_K].set(wqkv[l])
        w_slab = w_slab.at[base + W_OFF_WO: base + W_OFF_WO + N_HEAD * D_V,
                           0:D_MODEL].set(wo[l])
        w_slab = w_slab.at[base + W_OFF_W1: base + W_OFF_W1 + D_MODEL,
                           0:D_INNER].set(w1[l])
        w_slab = w_slab.at[base + W_OFF_W2: base + W_OFF_W2 + D_INNER,
                           0:D_MODEL].set(w2[l])
    w_slab = w_slab.astype(jnp.bfloat16)

    v_slab = jnp.zeros((V_ROWS, LANES), jnp.float32)
    v_slab = v_slab.at[V_OFF_LN0:V_OFF_LN0 + 2, 0:D_MODEL].set(ln0)
    for l in range(N_LAYERS):
        base = V_LAYER_BASE + l * V_LAYER_STRIDE
        v_slab = v_slab.at[base + V_OFF_LNA: base + V_OFF_LNA + 2, 0:D_MODEL].set(lnA[l])
        v_slab = v_slab.at[base + V_OFF_B1, 0:D_INNER].set(b1[l, 0])
        v_slab = v_slab.at[base + V_OFF_B2, 0:D_MODEL].set(b2[l, 0])
        v_slab = v_slab.at[base + V_OFF_LNF: base + V_OFF_LNF + 2, 0:D_MODEL].set(lnF[l])
    return w_slab, v_slab


@jax.jit
def encoder_forward(vis_feats, w_slab, v_slab):
    x2 = vis_feats.reshape(M, D_MODEL)      # fold batch into matmul M dimension
    out = pl.pallas_call(
        encoder_kernel,
        out_shape=jax.ShapeDtypeStruct((M, D_MODEL), jnp.float32),
        # No grid: the whole problem (~120 KB of operands) is VMEM-resident;
        # default whole-array BlockSpecs are used for all three operands.
    )(x2, w_slab, v_slab)
    return out.reshape(B, S, D_MODEL)


# ------------------------- pure-JAX reference (check) -----------------------
def ref_encoder(x, params):
    (ln0, wq, wk, wv, wo, lnA, w1, b1, w2, b2, lnF) = params

    def ln(x, gb):
        mu = x.mean(-1, keepdims=True)
        var = ((x - mu) ** 2).mean(-1, keepdims=True)
        return (x - mu) / jnp.sqrt(var + EPS) * gb[0] + gb[1]

    x = ln(x, ln0)
    for l in range(N_LAYERS):
        q = (x @ wq[l]).reshape(B, S, N_HEAD, D_K).transpose(0, 2, 1, 3)
        k = (x @ wk[l]).reshape(B, S, N_HEAD, D_K).transpose(0, 2, 1, 3)
        v = (x @ wv[l]).reshape(B, S, N_HEAD, D_V).transpose(0, 2, 1, 3)
        s = jnp.einsum("bhqd,bhkd->bhqk", q, k) / math.sqrt(D_K)
        p = jax.nn.softmax(s, axis=-1)
        o = jnp.einsum("bhqk,bhkd->bhqd", p, v).transpose(0, 2, 1, 3).reshape(B, S, -1)
        x = ln(o @ wo[l] + x, lnA[l])
        h1 = jax.nn.relu(x @ w1[l] + b1[l])
        x = ln(h1 @ w2[l] + b2[l] + x, lnF[l])
    return x


# --------------------------------- main --------------------------------------
if __name__ == "__main__":
    key = jax.random.PRNGKey(0)
    ks = jax.random.split(key, 16)

    def nrm(k, shape, scale=0.05):
        return (scale * jax.random.normal(k, shape)).astype(jnp.float32)

    def ln_params(k, n, d):
        g = 1.0 + 0.1 * jax.random.normal(k, (n, d) if n else (d,))
        b = jnp.zeros_like(g)
        if n:
            return jnp.stack([g, b], axis=1).astype(jnp.float32)    # (n, 2, d)
        return jnp.stack([g, b], axis=0).astype(jnp.float32)         # (2, d)

    params = (
        ln_params(ks[0], 0, D_MODEL),                                # Encoder layer_norm
        nrm(ks[1], (N_LAYERS, D_MODEL, N_HEAD * D_K)),               # w_qs
        nrm(ks[2], (N_LAYERS, D_MODEL, N_HEAD * D_K)),               # w_ks
        nrm(ks[3], (N_LAYERS, D_MODEL, N_HEAD * D_V)),               # w_vs
        nrm(ks[4], (N_LAYERS, N_HEAD * D_V, D_MODEL)),               # fc
        ln_params(ks[5], N_LAYERS, D_MODEL),                         # attn layer_norm
        nrm(ks[6], (N_LAYERS, D_MODEL, D_INNER)),                    # ffn w_1
        nrm(ks[7], (N_LAYERS, 1, D_INNER)),                          # ffn b_1
        nrm(ks[8], (N_LAYERS, D_INNER, D_MODEL)),                    # ffn w_2
        nrm(ks[9], (N_LAYERS, 1, D_MODEL)),                          # ffn b_2
        ln_params(ks[10], N_LAYERS, D_MODEL),                        # ffn layer_norm
    )

    vis_feats = jax.random.normal(ks[11], (B, S, D_MODEL), dtype=jnp.float32)

    # One-time parameter repack (outside the per-call path).
    w_slab, v_slab = pack_params(params)
    w_slab = jax.block_until_ready(w_slab)
    v_slab = jax.block_until_ready(v_slab)

    out = encoder_forward(vis_feats, w_slab, v_slab)
    out = jax.block_until_ready(out)

    ref = ref_encoder(vis_feats, params)
    assert out.shape == (B, S, D_MODEL)
    # Tolerance covers bf16 matmul inputs (f32 accumulation) and the
    # approx-reciprocal softmax denominator.
    assert jnp.allclose(out, ref, atol=2e-2, rtol=2e-2), "mismatch vs JAX reference"

    # TODO(synk): return_attns=True path (list of per-layer attention maps) is not
    # emitted by the kernel; only the default `(enc_output,)` path is implemented.
    print("KERNEL_OK")
</pallas_src>

<mosaic_0001>
module attributes {stable_mosaic.version = 11 : i64} {
  func.func @encoder_kernel(%arg0: memref<16x32xf32, #tpu.memory_space<vmem>>, %arg1: memref<320x128xbf16, #tpu.memory_space<vmem>>, %arg2: memref<72x128xf32, #tpu.memory_space<vmem>>, %arg3: memref<16x32xf32, #tpu.memory_space<vmem>>) attributes {dimension_semantics = [], scalar_prefetch = 0 : i64, scratch_operands = 0 : i64, tpu.core_type = #tpu.core_type<tc>} {
    %c0 = arith.constant 0 : index
    %c0_0 = arith.constant 0 : index
    %0 = vector.load %arg0[%c0, %c0_0] : memref<16x32xf32, #tpu.memory_space<vmem>>, vector<16x32xf32>
    %c0_1 = arith.constant 0 : index
    %c0_2 = arith.constant 0 : index
    %1 = vector.load %arg2[%c0_1, %c0_2] : memref<72x128xf32, #tpu.memory_space<vmem>>, vector<2x32xf32>
    %cst = arith.constant dense<0.000000e+00> : vector<16xf32>
    %2 = vector.multi_reduction <add>, %0, %cst [1] : vector<16x32xf32> to vector<16xf32>
    %3 = vector.shape_cast %2 : vector<16xf32> to vector<16x1xf32>
    %cst_3 = arith.constant 3.200000e+01 : f32
    %4 = vector.broadcast %cst_3 : f32 to vector<16x1xf32>
    %5 = arith.divf %3, %4 : vector<16x1xf32>
    %6 = vector.broadcast %5 : vector<16x1xf32> to vector<16x32xf32>
    %7 = arith.subf %0, %6 : vector<16x32xf32>
    %8 = arith.mulf %7, %7 : vector<16x32xf32>
    %cst_4 = arith.constant dense<0.000000e+00> : vector<16xf32>
    %9 = vector.multi_reduction <add>, %8, %cst_4 [1] : vector<16x32xf32> to vector<16xf32>
    %10 = vector.shape_cast %9 : vector<16xf32> to vector<16x1xf32>
    %cst_5 = arith.constant 3.200000e+01 : f32
    %11 = vector.broadcast %cst_5 : f32 to vector<16x1xf32>
    %12 = arith.divf %10, %11 : vector<16x1xf32>
    %13 = vector.broadcast %5 : vector<16x1xf32> to vector<16x32xf32>
    %14 = arith.subf %0, %13 : vector<16x32xf32>
    %cst_6 = arith.constant 9.99999997E-7 : f32
    %15 = vector.broadcast %cst_6 : f32 to vector<16x1xf32>
    %16 = arith.addf %12, %15 : vector<16x1xf32>
    %17 = math.rsqrt %16 : vector<16x1xf32>
    %18 = vector.broadcast %17 : vector<16x1xf32> to vector<16x32xf32>
    %19 = arith.mulf %14, %18 : vector<16x32xf32>
    %20 = vector.extract_strided_slice %1 {offsets = [0, 0], sizes = [1, 32], strides = [1, 1]} : vector<2x32xf32> to vector<1x32xf32>
    %21 = vector.broadcast %20 : vector<1x32xf32> to vector<16x32xf32>
    %22 = arith.mulf %19, %21 : vector<16x32xf32>
    %23 = vector.extract_strided_slice %1 {offsets = [1, 0], sizes = [1, 32], strides = [1, 1]} : vector<2x32xf32> to vector<1x32xf32>
    %24 = vector.broadcast %23 : vector<1x32xf32> to vector<16x32xf32>
    %25 = arith.addf %22, %24 : vector<16x32xf32>
    %26 = arith.truncf %25 : vector<16x32xf32> to vector<16x32xbf16>
    %c0_7 = arith.constant 0 : index
    %c0_8 = arith.constant 0 : index
    %27 = vector.load %arg1[%c0_7, %c0_8] : memref<320x128xbf16, #tpu.memory_space<vmem>>, vector<32x96xbf16>
    %cst_9 = arith.constant dense<0.000000e+00> : vector<16x96xf32>
    %28 = tpu.matmul %26, %27, %cst_9 {dimension_numbers = #tpu.dot_dimension_numbers<[1], [0], [0], [1], [0, 0, 1, 1], [], []>} : vector<16x32xbf16>, vector<32x96xbf16>, vector<16x96xf32> -> vector<16x96xf32>
    %cst_10 = arith.constant 0.000000e+00 : f32
    %29 = vector.broadcast %cst_10 : f32 to vector<16x32xf32>
    %30 = vector.extract_strided_slice %28 {offsets = [0, 0], sizes = [16, 16], strides = [1, 1]} : vector<16x96xf32> to vector<16x16xf32>
    %31 = vector.shape_cast %30 : vector<16x16xf32> to vector<2x8x16xf32>
    %32 = vector.extract_strided_slice %28 {offsets = [0, 32], sizes = [16, 16], strides = [1, 1]} : vector<16x96xf32> to vector<16x16xf32>
    %33 = vector.shape_cast %32 : vector<16x16xf32> to vector<2x8x16xf32>
    %34 = vector.extract_strided_slice %28 {offsets = [0, 64], sizes = [16, 16], strides = [1, 1]} : vector<16x96xf32> to vector<16x16xf32>
    %35 = vector.shape_cast %34 : vector<16x16xf32> to vector<2x8x16xf32>
    %36 = arith.truncf %31 : vector<2x8x16xf32> to vector<2x8x16xbf16>
    %37 = arith.truncf %33 : vector<2x8x16xf32> to vector<2x8x16xbf16>
    "tpu.trace_start"() <{level = 10 : i32, message = "bqd,bkd->bqk"}> : () -> ()
    %cst_11 = arith.constant dense<0.000000e+00> : vector<2x8x8xf32>
    %38 = tpu.matmul %36, %37, %cst_11 {dimension_numbers = #tpu.dot_dimension_numbers<[2], [2], [1], [1], [0, 0, 0, 1, 1, 1], [0], [0]>} : vector<2x8x16xbf16>, vector<2x8x16xbf16>, vector<2x8x8xf32> -> vector<2x8x8xf32>
    "tpu.trace_stop"() : () -> ()
    %cst_12 = arith.constant 2.500000e-01 : f32
    %39 = vector.broadcast %cst_12 : f32 to vector<2x8x8xf32>
    %40 = arith.mulf %38, %39 : vector<2x8x8xf32>
    %cst_13 = arith.constant dense<0xFF800000> : vector<2x8xf32>
    %41 = vector.multi_reduction <maximumf>, %40, %cst_13 [2] : vector<2x8x8xf32> to vector<2x8xf32>
    %42 = vector.shape_cast %41 : vector<2x8xf32> to vector<2x8x1xf32>
    %43 = vector.broadcast %42 : vector<2x8x1xf32> to vector<2x8x8xf32>
    %44 = arith.subf %40, %43 : vector<2x8x8xf32>
    %45 = math.exp %44 : vector<2x8x8xf32>
    %cst_14 = arith.constant dense<0.000000e+00> : vector<2x8xf32>
    %46 = vector.multi_reduction <add>, %45, %cst_14 [2] : vector<2x8x8xf32> to vector<2x8xf32>
    %47 = vector.shape_cast %46 : vector<2x8xf32> to vector<2x8x1xf32>
    %48 = tpu.reciprocal %47 {approx = true} : vector<2x8x1xf32> -> vector<2x8x1xf32>
    %49 = vector.broadcast %48 : vector<2x8x1xf32> to vector<2x8x8xf32>
    %50 = arith.mulf %45, %49 : vector<2x8x8xf32>
    %51 = arith.truncf %50 : vector<2x8x8xf32> to vector<2x8x8xbf16>
    %52 = arith.truncf %35 : vector<2x8x16xf32> to vector<2x8x16xbf16>
    "tpu.trace_start"() <{level = 10 : i32, message = "bqk,bkd->bqd"}> : () -> ()
    %cst_15 = arith.constant dense<0.000000e+00> : vector<2x8x16xf32>
    %53 = tpu.matmul %51, %52, %cst_15 {dimension_numbers = #tpu.dot_dimension_numbers<[2], [1], [1], [2], [0, 0, 0, 1, 1, 2], [0], [0]>} : vector<2x8x8xbf16>, vector<2x8x16xbf16>, vector<2x8x16xf32> -> vector<2x8x16xf32>
    "tpu.trace_stop"() : () -> ()
    %c32 = arith.constant 32 : index
    %c0_16 = arith.constant 0 : index
    %54 = vector.load %arg1[%c32, %c0_16] : memref<320x128xbf16, #tpu.memory_space<vmem>>, vector<16x32xbf16>
    %55 = vector.shape_cast %53 : vector<2x8x16xf32> to vector<16x16xf32>
    %56 = arith.truncf %55 : vector<16x16xf32> to vector<16x16xbf16>
    %cst_17 = arith.constant dense<0.000000e+00> : vector<16x32xf32>
    %57 = tpu.matmul %56, %54, %cst_17 {dimension_numbers = #tpu.dot_dimension_numbers<[1], [0], [0], [1], [0, 0, 1, 1], [], []>} : vector<16x16xbf16>, vector<16x32xbf16>, vector<16x32xf32> -> vector<16x32xf32>
    %58 = arith.addf %29, %57 : vector<16x32xf32>
    %59 = vector.extract_strided_slice %28 {offsets = [0, 16], sizes = [16, 16], strides = [1, 1]} : vector<16x96xf32> to vector<16x16xf32>
    %60 = vector.shape_cast %59 : vector<16x16xf32> to vector<2x8x16xf32>
    %61 = vector.extract_strided_slice %28 {offsets = [0, 48], sizes = [16, 16], strides = [1, 1]} : vector<16x96xf32> to vector<16x16xf32>
    %62 = vector.shape_cast %61 : vector<16x16xf32> to vector<2x8x16xf32>
    %63 = vector.extract_strided_slice %28 {offsets = [0, 80], sizes = [16, 16], strides = [1, 1]} : vector<16x96xf32> to vector<16x16xf32>
    %64 = vector.shape_cast %63 : vector<16x16xf32> to vector<2x8x16xf32>
    %65 = arith.truncf %60 : vector<2x8x16xf32> to vector<2x8x16xbf16>
    %66 = arith.truncf %62 : vector<2x8x16xf32> to vector<2x8x16xbf16>
    "tpu.trace_start"() <{level = 10 : i32, message = "bqd,bkd->bqk"}> : () -> ()
    %cst_18 = arith.constant dense<0.000000e+00> : vector<2x8x8xf32>
    %67 = tpu.matmul %65, %66, %cst_18 {dimension_numbers = #tpu.dot_dimension_numbers<[2], [2], [1], [1], [0, 0, 0, 1, 1, 1], [0], [0]>} : vector<2x8x16xbf16>, vector<2x8x16xbf16>, vector<2x8x8xf32> -> vector<2x8x8xf32>
    "tpu.trace_stop"() : () -> ()
    %cst_19 = arith.constant 2.500000e-01 : f32
    %68 = vector.broadcast %cst_19 : f32 to vector<2x8x8xf32>
    %69 = arith.mulf %67, %68 : vector<2x8x8xf32>
    %cst_20 = arith.constant dense<0xFF800000> : vector<2x8xf32>
    %70 = vector.multi_reduction <maximumf>, %69, %cst_20 [2] : vector<2x8x8xf32> to vector<2x8xf32>
    %71 = vector.shape_cast %70 : vector<2x8xf32> to vector<2x8x1xf32>
    %72 = vector.broadcast %71 : vector<2x8x1xf32> to vector<2x8x8xf32>
    %73 = arith.subf %69, %72 : vector<2x8x8xf32>
    %74 = math.exp %73 : vector<2x8x8xf32>
    %cst_21 = arith.constant dense<0.000000e+00> : vector<2x8xf32>
    %75 = vector.multi_reduction <add>, %74, %cst_21 [2] : vector<2x8x8xf32> to vector<2x8xf32>
    %76 = vector.shape_cast %75 : vector<2x8xf32> to vector<2x8x1xf32>
    %77 = tpu.reciprocal %76 {approx = true} : vector<2x8x1xf32> -> vector<2x8x1xf32>
    %78 = vector.broadcast %77 : vector<2x8x1xf32> to vector<2x8x8xf32>
    %79 = arith.mulf %74, %78 : vector<2x8x8xf32>
    %80 = arith.truncf %79 : vector<2x8x8xf32> to vector<2x8x8xbf16>
    %81 = arith.truncf %64 : vector<2x8x16xf32> to vector<2x8x16xbf16>
    "tpu.trace_start"() <{level = 10 : i32, message = "bqk,bkd->bqd"}> : () -> ()
    %cst_22 = arith.constant dense<0.000000e+00> : vector<2x8x16xf32>
    %82 = tpu.matmul %80, %81, %cst_22 {dimension_numbers = #tpu.dot_dimension_numbers<[2], [1], [1], [2], [0, 0, 0, 1, 1, 2], [0], [0]>} : vector<2x8x8xbf16>, vector<2x8x16xbf16>, vector<2x8x16xf32> -> vector<2x8x16xf32>
    "tpu.trace_stop"() : () -> ()
    %c48 = arith.constant 48 : index
    %c0_23 = arith.constant 0 : index
    %83 = vector.load %arg1[%c48, %c0_23] : memref<320x128xbf16, #tpu.memory_space<vmem>>, vector<16x32xbf16>
    %84 = vector.shape_cast %82 : vector<2x8x16xf32> to vector<16x16xf32>
    %85 = arith.truncf %84 : vector<16x16xf32> to vector<16x16xbf16>
    %cst_24 = arith.constant dense<0.000000e+00> : vector<16x32xf32>
    %86 = tpu.matmul %85, %83, %cst_24 {dimension_numbers = #tpu.dot_dimension_numbers<[1], [0], [0], [1], [0, 0, 1, 1], [], []>} : vector<16x16xbf16>, vector<16x32xbf16>, vector<16x32xf32> -> vector<16x32xf32>
    %87 = arith.addf %58, %86 : vector<16x32xf32>
    %88 = arith.addf %87, %25 : vector<16x32xf32>
    %c8 = arith.constant 8 : index
    %c0_25 = arith.constant 0 : index
    %89 = vector.load %arg2[%c8, %c0_25] : memref<72x128xf32, #tpu.memory_space<vmem>>, vector<2x32xf32>
    %cst_26 = arith.constant dense<0.000000e+00> : vector<16xf32>
    %90 = vector.multi_reduction <add>, %88, %cst_26 [1] : vector<16x32xf32> to vector<16xf32>
    %91 = vector.shape_cast %90 : vector<16xf32> to vector<16x1xf32>
    %cst_27 = arith.constant 3.200000e+01 : f32
    %92 = vector.broadcast %cst_27 : f32 to vector<16x1xf32>
    %93 = arith.divf %91, %92 : vector<16x1xf32>
    %94 = vector.broadcast %93 : vector<16x1xf32> to vector<16x32xf32>
    %95 = arith.subf %88, %94 : vector<16x32xf32>
    %96 = arith.mulf %95, %95 : vector<16x32xf32>
    %cst_28 = arith.constant dense<0.000000e+00> : vector<16xf32>
    %97 = vector.multi_reduction <add>, %96, %cst_28 [1] : vector<16x32xf32> to vector<16xf32>
    %98 = vector.shape_cast %97 : vector<16xf32> to vector<16x1xf32>
    %cst_29 = arith.constant 3.200000e+01 : f32
    %99 = vector.broadcast %cst_29 : f32 to vector<16x1xf32>
    %100 = arith.divf %98, %99 : vector<16x1xf32>
    %101 = vector.broadcast %93 : vector<16x1xf32> to vector<16x32xf32>
    %102 = arith.subf %88, %101 : vector<16x32xf32>
    %cst_30 = arith.constant 9.99999997E-7 : f32
    %103 = vector.broadcast %cst_30 : f32 to vector<16x1xf32>
    %104 = arith.addf %100, %103 : vector<16x1xf32>
    %105 = math.rsqrt %104 : vector<16x1xf32>
    %106 = vector.broadcast %105 : vector<16x1xf32> to vector<16x32xf32>
    %107 = arith.mulf %102, %106 : vector<16x32xf32>
    %108 = vector.extract_strided_slice %89 {offsets = [0, 0], sizes = [1, 32], strides = [1, 1]} : vector<2x32xf32> to vector<1x32xf32>
    %109 = vector.broadcast %108 : vector<1x32xf32> to vector<16x32xf32>
    %110 = arith.mulf %107, %109 : vector<16x32xf32>
    %111 = vector.extract_strided_slice %89 {offsets = [1, 0], sizes = [1, 32], strides = [1, 1]} : vector<2x32xf32> to vector<1x32xf32>
    %112 = vector.broadcast %111 : vector<1x32xf32> to vector<16x32xf32>
    %113 = arith.addf %110, %112 : vector<16x32xf32>
    %c64 = arith.constant 64 : index
    %c0_31 = arith.constant 0 : index
    %114 = vector.load %arg1[%c64, %c0_31] : memref<320x128xbf16, #tpu.memory_space<vmem>>, vector<32x64xbf16>
    %c96 = arith.constant 96 : index
    %c0_32 = arith.constant 0 : index
    %115 = vector.load %arg1[%c96, %c0_32] : memref<320x128xbf16, #tpu.memory_space<vmem>>, vector<64x32xbf16>
    %c16 = arith.constant 16 : index
    %c0_33 = arith.constant 0 : index
    %116 = vector.load %arg2[%c16, %c0_33] : memref<72x128xf32, #tpu.memory_space<vmem>>, vector<1x64xf32>
    %c24 = arith.constant 24 : index
    %c0_34 = arith.constant 0 : index
    %117 = vector.load %arg2[%c24, %c0_34] : memref<72x128xf32, #tpu.memory_space<vmem>>, vector<1x32xf32>
    %118 = arith.truncf %113 : vector<16x32xf32> to vector<16x32xbf16>
    %cst_35 = arith.constant dense<0.000000e+00> : vector<16x64xf32>
    %119 = tpu.matmul %118, %114, %cst_35 {dimension_numbers = #tpu.dot_dimension_numbers<[1], [0], [0], [1], [0, 0, 1, 1], [], []>} : vector<16x32xbf16>, vector<32x64xbf16>, vector<16x64xf32> -> vector<16x64xf32>
    %120 = vector.broadcast %116 : vector<1x64xf32> to vector<16x64xf32>
    %121 = arith.addf %119, %120 : vector<16x64xf32>
    %cst_36 = arith.constant 0.000000e+00 : f32
    %122 = vector.broadcast %cst_36 : f32 to vector<16x64xf32>
    %123 = arith.maximumf %121, %122 : vector<16x64xf32>
    %124 = arith.truncf %123 : vector<16x64xf32> to vector<16x64xbf16>
    %cst_37 = arith.constant dense<0.000000e+00> : vector<16x32xf32>
    %125 = tpu.matmul %124, %115, %cst_37 {dimension_numbers = #tpu.dot_dimension_numbers<[1], [0], [0], [1], [0, 0, 1, 1], [], []>} : vector<16x64xbf16>, vector<64x32xbf16>, vector<16x32xf32> -> vector<16x32xf32>
    %126 = vector.broadcast %117 : vector<1x32xf32> to vector<16x32xf32>
    %127 = arith.addf %125, %126 : vector<16x32xf32>
    %128 = arith.addf %127, %113 : vector<16x32xf32>
    %c32_38 = arith.constant 32 : index
    %c0_39 = arith.constant 0 : index
    %129 = vector.load %arg2[%c32_38, %c0_39] : memref<72x128xf32, #tpu.memory_space<vmem>>, vector<2x32xf32>
    %cst_40 = arith.constant dense<0.000000e+00> : vector<16xf32>
    %130 = vector.multi_reduction <add>, %128, %cst_40 [1] : vector<16x32xf32> to vector<16xf32>
    %131 = vector.shape_cast %130 : vector<16xf32> to vector<16x1xf32>
    %cst_41 = arith.constant 3.200000e+01 : f32
    %132 = vector.broadcast %cst_41 : f32 to vector<16x1xf32>
    %133 = arith.divf %131, %132 : vector<16x1xf32>
    %134 = vector.broadcast %133 : vector<16x1xf32> to vector<16x32xf32>
    %135 = arith.subf %128, %134 : vector<16x32xf32>
    %136 = arith.mulf %135, %135 : vector<16x32xf32>
    %cst_42 = arith.constant dense<0.000000e+00> : vector<16xf32>
    %137 = vector.multi_reduction <add>, %136, %cst_42 [1] : vector<16x32xf32> to vector<16xf32>
    %138 = vector.shape_cast %137 : vector<16xf32> to vector<16x1xf32>
    %cst_43 = arith.constant 3.200000e+01 : f32
    %139 = vector.broadcast %cst_43 : f32 to vector<16x1xf32>
    %140 = arith.divf %138, %139 : vector<16x1xf32>
    %141 = vector.broadcast %133 : vector<16x1xf32> to vector<16x32xf32>
    %142 = arith.subf %128, %141 : vector<16x32xf32>
    %cst_44 = arith.constant 9.99999997E-7 : f32
    %143 = vector.broadcast %cst_44 : f32 to vector<16x1xf32>
    %144 = arith.addf %140, %143 : vector<16x1xf32>
    %145 = math.rsqrt %144 : vector<16x1xf32>
    %146 = vector.broadcast %145 : vector<16x1xf32> to vector<16x32xf32>
    %147 = arith.mulf %142, %146 : vector<16x32xf32>
    %148 = vector.extract_strided_slice %129 {offsets = [0, 0], sizes = [1, 32], strides = [1, 1]} : vector<2x32xf32> to vector<1x32xf32>
    %149 = vector.broadcast %148 : vector<1x32xf32> to vector<16x32xf32>
    %150 = arith.mulf %147, %149 : vector<16x32xf32>
    %151 = vector.extract_strided_slice %129 {offsets = [1, 0], sizes = [1, 32], strides = [1, 1]} : vector<2x32xf32> to vector<1x32xf32>
    %152 = vector.broadcast %151 : vector<1x32xf32> to vector<16x32xf32>
    %153 = arith.addf %150, %152 : vector<16x32xf32>
    %154 = arith.truncf %153 : vector<16x32xf32> to vector<16x32xbf16>
    %c160 = arith.constant 160 : index
    %c0_45 = arith.constant 0 : index
    %155 = vector.load %arg1[%c160, %c0_45] : memref<320x128xbf16, #tpu.memory_space<vmem>>, vector<32x96xbf16>
    %cst_46 = arith.constant dense<0.000000e+00> : vector<16x96xf32>
    %156 = tpu.matmul %154, %155, %cst_46 {dimension_numbers = #tpu.dot_dimension_numbers<[1], [0], [0], [1], [0, 0, 1, 1], [], []>} : vector<16x32xbf16>, vector<32x96xbf16>, vector<16x96xf32> -> vector<16x96xf32>
    %cst_47 = arith.constant 0.000000e+00 : f32
    %157 = vector.broadcast %cst_47 : f32 to vector<16x32xf32>
    %158 = vector.extract_strided_slice %156 {offsets = [0, 0], sizes = [16, 16], strides = [1, 1]} : vector<16x96xf32> to vector<16x16xf32>
    %159 = vector.shape_cast %158 : vector<16x16xf32> to vector<2x8x16xf32>
    %160 = vector.extract_strided_slice %156 {offsets = [0, 32], sizes = [16, 16], strides = [1, 1]} : vector<16x96xf32> to vector<16x16xf32>
    %161 = vector.shape_cast %160 : vector<16x16xf32> to vector<2x8x16xf32>
    %162 = vector.extract_strided_slice %156 {offsets = [0, 64], sizes = [16, 16], strides = [1, 1]} : vector<16x96xf32> to vector<16x16xf32>
    %163 = vector.shape_cast %162 : vector<16x16xf32> to vector<2x8x16xf32>
    %164 = arith.truncf %159 : vector<2x8x16xf32> to vector<2x8x16xbf16>
    %165 = arith.truncf %161 : vector<2x8x16xf32> to vector<2x8x16xbf16>
    "tpu.trace_start"() <{level = 10 : i32, message = "bqd,bkd->bqk"}> : () -> ()
    %cst_48 = arith.constant dense<0.000000e+00> : vector<2x8x8xf32>
    %166 = tpu.matmul %164, %165, %cst_48 {dimension_numbers = #tpu.dot_dimension_numbers<[2], [2], [1], [1], [0, 0, 0, 1, 1, 1], [0], [0]>} : vector<2x8x16xbf16>, vector<2x8x16xbf16>, vector<2x8x8xf32> -> vector<2x8x8xf32>
    "tpu.trace_stop"() : () -> ()
    %cst_49 = arith.constant 2.500000e-01 : f32
    %167 = vector.broadcast %cst_49 : f32 to vector<2x8x8xf32>
    %168 = arith.mulf %166, %167 : vector<2x8x8xf32>
    %cst_50 = arith.constant dense<0xFF800000> : vector<2x8xf32>
    %169 = vector.multi_reduction <maximumf>, %168, %cst_50 [2] : vector<2x8x8xf32> to vector<2x8xf32>
    %170 = vector.shape_cast %169 : vector<2x8xf32> to vector<2x8x1xf32>
    %171 = vector.broadcast %170 : vector<2x8x1xf32> to vector<2x8x8xf32>
    %172 = arith.subf %168, %171 : vector<2x8x8xf32>
    %173 = math.exp %172 : vector<2x8x8xf32>
    %cst_51 = arith.constant dense<0.000000e+00> : vector<2x8xf32>
    %174 = vector.multi_reduction <add>, %173, %cst_51 [2] : vector<2x8x8xf32> to vector<2x8xf32>
    %175 = vector.shape_cast %174 : vector<2x8xf32> to vector<2x8x1xf32>
    %176 = tpu.reciprocal %175 {approx = true} : vector<2x8x1xf32> -> vector<2x8x1xf32>
    %177 = vector.broadcast %176 : vector<2x8x1xf32> to vector<2x8x8xf32>
    %178 = arith.mulf %173, %177 : vector<2x8x8xf32>
    %179 = arith.truncf %178 : vector<2x8x8xf32> to vector<2x8x8xbf16>
    %180 = arith.truncf %163 : vector<2x8x16xf32> to vector<2x8x16xbf16>
    "tpu.trace_start"() <{level = 10 : i32, message = "bqk,bkd->bqd"}> : () -> ()
    %cst_52 = arith.constant dense<0.000000e+00> : vector<2x8x16xf32>
    %181 = tpu.matmul %179, %180, %cst_52 {dimension_numbers = #tpu.dot_dimension_numbers<[2], [1], [1], [2], [0, 0, 0, 1, 1, 2], [0], [0]>} : vector<2x8x8xbf16>, vector<2x8x16xbf16>, vector<2x8x16xf32> -> vector<2x8x16xf32>
    "tpu.trace_stop"() : () -> ()
    %c192 = arith.constant 192 : index
    %c0_53 = arith.constant 0 : index
    %182 = vector.load %arg1[%c192, %c0_53] : memref<320x128xbf16, #tpu.memory_space<vmem>>, vector<16x32xbf16>
    %183 = vector.shape_cast %181 : vector<2x8x16xf32> to vector<16x16xf32>
    %184 = arith.truncf %183 : vector<16x16xf32> to vector<16x16xbf16>
    %cst_54 = arith.constant dense<0.000000e+00> : vector<16x32xf32>
    %185 = tpu.matmul %184, %182, %cst_54 {dimension_numbers = #tpu.dot_dimension_numbers<[1], [0], [0], [1], [0, 0, 1, 1], [], []>} : vector<16x16xbf16>, vector<16x32xbf16>, vector<16x32xf32> -> vector<16x32xf32>
    %186 = arith.addf %157, %185 : vector<16x32xf32>
    %187 = vector.extract_strided_slice %156 {offsets = [0, 16], sizes = [16, 16], strides = [1, 1]} : vector<16x96xf32> to vector<16x16xf32>
    %188 = vector.shape_cast %187 : vector<16x16xf32> to vector<2x8x16xf32>
    %189 = vector.extract_strided_slice %156 {offsets = [0, 48], sizes = [16, 16], strides = [1, 1]} : vector<16x96xf32> to vector<16x16xf32>
    %190 = vector.shape_cast %189 : vector<16x16xf32> to vector<2x8x16xf32>
    %191 = vector.extract_strided_slice %156 {offsets = [0, 80], sizes = [16, 16], strides = [1, 1]} : vector<16x96xf32> to vector<16x16xf32>
    %192 = vector.shape_cast %191 : vector<16x16xf32> to vector<2x8x16xf32>
    %193 = arith.truncf %188 : vector<2x8x16xf32> to vector<2x8x16xbf16>
    %194 = arith.truncf %190 : vector<2x8x16xf32> to vector<2x8x16xbf16>
    "tpu.trace_start"() <{level = 10 : i32, message = "bqd,bkd->bqk"}> : () -> ()
    %cst_55 = arith.constant dense<0.000000e+00> : vector<2x8x8xf32>
    %195 = tpu.matmul %193, %194, %cst_55 {dimension_numbers = #tpu.dot_dimension_numbers<[2], [2], [1], [1], [0, 0, 0, 1, 1, 1], [0], [0]>} : vector<2x8x16xbf16>, vector<2x8x16xbf16>, vector<2x8x8xf32> -> vector<2x8x8xf32>
    "tpu.trace_stop"() : () -> ()
    %cst_56 = arith.constant 2.500000e-01 : f32
    %196 = vector.broadcast %cst_56 : f32 to vector<2x8x8xf32>
    %197 = arith.mulf %195, %196 : vector<2x8x8xf32>
    %cst_57 = arith.constant dense<0xFF800000> : vector<2x8xf32>
    %198 = vector.multi_reduction <maximumf>, %197, %cst_57 [2] : vector<2x8x8xf32> to vector<2x8xf32>
    %199 = vector.shape_cast %198 : vector<2x8xf32> to vector<2x8x1xf32>
    %200 = vector.broadcast %199 : vector<2x8x1xf32> to vector<2x8x8xf32>
    %201 = arith.subf %197, %200 : vector<2x8x8xf32>
    %202 = math.exp %201 : vector<2x8x8xf32>
    %cst_58 = arith.constant dense<0.000000e+00> : vector<2x8xf32>
    %203 = vector.multi_reduction <add>, %202, %cst_58 [2] : vector<2x8x8xf32> to vector<2x8xf32>
    %204 = vector.shape_cast %203 : vector<2x8xf32> to vector<2x8x1xf32>
    %205 = tpu.reciprocal %204 {approx = true} : vector<2x8x1xf32> -> vector<2x8x1xf32>
    %206 = vector.broadcast %205 : vector<2x8x1xf32> to vector<2x8x8xf32>
    %207 = arith.mulf %202, %206 : vector<2x8x8xf32>
    %208 = arith.truncf %207 : vector<2x8x8xf32> to vector<2x8x8xbf16>
    %209 = arith.truncf %192 : vector<2x8x16xf32> to vector<2x8x16xbf16>
    "tpu.trace_start"() <{level = 10 : i32, message = "bqk,bkd->bqd"}> : () -> ()
    %cst_59 = arith.constant dense<0.000000e+00> : vector<2x8x16xf32>
    %210 = tpu.matmul %208, %209, %cst_59 {dimension_numbers = #tpu.dot_dimension_numbers<[2], [1], [1], [2], [0, 0, 0, 1, 1, 2], [0], [0]>} : vector<2x8x8xbf16>, vector<2x8x16xbf16>, vector<2x8x16xf32> -> vector<2x8x16xf32>
    "tpu.trace_stop"() : () -> ()
    %c208 = arith.constant 208 : index
    %c0_60 = arith.constant 0 : index
    %211 = vector.load %arg1[%c208, %c0_60] : memref<320x128xbf16, #tpu.memory_space<vmem>>, vector<16x32xbf16>
    %212 = vector.shape_cast %210 : vector<2x8x16xf32> to vector<16x16xf32>
    %213 = arith.truncf %212 : vector<16x16xf32> to vector<16x16xbf16>
    %cst_61 = arith.constant dense<0.000000e+00> : vector<16x32xf32>
    %214 = tpu.matmul %213, %211, %cst_61 {dimension_numbers = #tpu.dot_dimension_numbers<[1], [0], [0], [1], [0, 0, 1, 1], [], []>} : vector<16x16xbf16>, vector<16x32xbf16>, vector<16x32xf32> -> vector<16x32xf32>
    %215 = arith.addf %186, %214 : vector<16x32xf32>
    %216 = arith.addf %215, %153 : vector<16x32xf32>
    %c40 = arith.constant 40 : index
    %c0_62 = arith.constant 0 : index
    %217 = vector.load %arg2[%c40, %c0_62] : memref<72x128xf32, #tpu.memory_space<vmem>>, vector<2x32xf32>
    %cst_63 = arith.constant dense<0.000000e+00> : vector<16xf32>
    %218 = vector.multi_reduction <add>, %216, %cst_63 [1] : vector<16x32xf32> to vector<16xf32>
    %219 = vector.shape_cast %218 : vector<16xf32> to vector<16x1xf32>
    %cst_64 = arith.constant 3.200000e+01 : f32
    %220 = vector.broadcast %cst_64 : f32 to vector<16x1xf32>
    %221 = arith.divf %219, %220 : vector<16x1xf32>
    %222 = vector.broadcast %221 : vector<16x1xf32> to vector<16x32xf32>
    %223 = arith.subf %216, %222 : vector<16x32xf32>
    %224 = arith.mulf %223, %223 : vector<16x32xf32>
    %cst_65 = arith.constant dense<0.000000e+00> : vector<16xf32>
    %225 = vector.multi_reduction <add>, %224, %cst_65 [1] : vector<16x32xf32> to vector<16xf32>
    %226 = vector.shape_cast %225 : vector<16xf32> to vector<16x1xf32>
    %cst_66 = arith.constant 3.200000e+01 : f32
    %227 = vector.broadcast %cst_66 : f32 to vector<16x1xf32>
    %228 = arith.divf %226, %227 : vector<16x1xf32>
    %229 = vector.broadcast %221 : vector<16x1xf32> to vector<16x32xf32>
    %230 = arith.subf %216, %229 : vector<16x32xf32>
    %cst_67 = arith.constant 9.99999997E-7 : f32
    %231 = vector.broadcast %cst_67 : f32 to vector<16x1xf32>
    %232 = arith.addf %228, %231 : vector<16x1xf32>
    %233 = math.rsqrt %232 : vector<16x1xf32>
    %234 = vector.broadcast %233 : vector<16x1xf32> to vector<16x32xf32>
    %235 = arith.mulf %230, %234 : vector<16x32xf32>
    %236 = vector.extract_strided_slice %217 {offsets = [0, 0], sizes = [1, 32], strides = [1, 1]} : vector<2x32xf32> to vector<1x32xf32>
    %237 = vector.broadcast %236 : vector<1x32xf32> to vector<16x32xf32>
    %238 = arith.mulf %235, %237 : vector<16x32xf32>
    %239 = vector.extract_strided_slice %217 {offsets = [1, 0], sizes = [1, 32], strides = [1, 1]} : vector<2x32xf32> to vector<1x32xf32>
    %240 = vector.broadcast %239 : vector<1x32xf32> to vector<16x32xf32>
    %241 = arith.addf %238, %240 : vector<16x32xf32>
    %c224 = arith.constant 224 : index
    %c0_68 = arith.constant 0 : index
    %242 = vector.load %arg1[%c224, %c0_68] : memref<320x128xbf16, #tpu.memory_space<vmem>>, vector<32x64xbf16>
    %c256 = arith.constant 256 : index
    %c0_69 = arith.constant 0 : index
    %243 = vector.load %arg1[%c256, %c0_69] : memref<320x128xbf16, #tpu.memory_space<vmem>>, vector<64x32xbf16>
    %c48_70 = arith.constant 48 : index
    %c0_71 = arith.constant 0 : index
    %244 = vector.load %arg2[%c48_70, %c0_71] : memref<72x128xf32, #tpu.memory_space<vmem>>, vector<1x64xf32>
    %c56 = arith.constant 56 : index
    %c0_72 = arith.constant 0 : index
    %245 = vector.load %arg2[%c56, %c0_72] : memref<72x128xf32, #tpu.memory_space<vmem>>, vector<1x32xf32>
    %246 = arith.truncf %241 : vector<16x32xf32> to vector<16x32xbf16>
    %cst_73 = arith.constant dense<0.000000e+00> : vector<16x64xf32>
    %247 = tpu.matmul %246, %242, %cst_73 {dimension_numbers = #tpu.dot_dimension_numbers<[1], [0], [0], [1], [0, 0, 1, 1], [], []>} : vector<16x32xbf16>, vector<32x64xbf16>, vector<16x64xf32> -> vector<16x64xf32>
    %248 = vector.broadcast %244 : vector<1x64xf32> to vector<16x64xf32>
    %249 = arith.addf %247, %248 : vector<16x64xf32>
    %cst_74 = arith.constant 0.000000e+00 : f32
    %250 = vector.broadcast %cst_74 : f32 to vector<16x64xf32>
    %251 = arith.maximumf %249, %250 : vector<16x64xf32>
    %252 = arith.truncf %251 : vector<16x64xf32> to vector<16x64xbf16>
    %cst_75 = arith.constant dense<0.000000e+00> : vector<16x32xf32>
    %253 = tpu.matmul %252, %243, %cst_75 {dimension_numbers = #tpu.dot_dimension_numbers<[1], [0], [0], [1], [0, 0, 1, 1], [], []>} : vector<16x64xbf16>, vector<64x32xbf16>, vector<16x32xf32> -> vector<16x32xf32>
    %254 = vector.broadcast %245 : vector<1x32xf32> to vector<16x32xf32>
    %255 = arith.addf %253, %254 : vector<16x32xf32>
    %256 = arith.addf %255, %241 : vector<16x32xf32>
    %c64_76 = arith.constant 64 : index
    %c0_77 = arith.constant 0 : index
    %257 = vector.load %arg2[%c64_76, %c0_77] : memref<72x128xf32, #tpu.memory_space<vmem>>, vector<2x32xf32>
    %cst_78 = arith.constant dense<0.000000e+00> : vector<16xf32>
    %258 = vector.multi_reduction <add>, %256, %cst_78 [1] : vector<16x32xf32> to vector<16xf32>
    %259 = vector.shape_cast %258 : vector<16xf32> to vector<16x1xf32>
    %cst_79 = arith.constant 3.200000e+01 : f32
    %260 = vector.broadcast %cst_79 : f32 to vector<16x1xf32>
    %261 = arith.divf %259, %260 : vector<16x1xf32>
    %262 = vector.broadcast %261 : vector<16x1xf32> to vector<16x32xf32>
    %263 = arith.subf %256, %262 : vector<16x32xf32>
    %264 = arith.mulf %263, %263 : vector<16x32xf32>
    %cst_80 = arith.constant dense<0.000000e+00> : vector<16xf32>
    %265 = vector.multi_reduction <add>, %264, %cst_80 [1] : vector<16x32xf32> to vector<16xf32>
    %266 = vector.shape_cast %265 : vector<16xf32> to vector<16x1xf32>
    %cst_81 = arith.constant 3.200000e+01 : f32
    %267 = vector.broadcast %cst_81 : f32 to vector<16x1xf32>
    %268 = arith.divf %266, %267 : vector<16x1xf32>
    %269 = vector.broadcast %261 : vector<16x1xf32> to vector<16x32xf32>
    %270 = arith.subf %256, %269 : vector<16x32xf32>
    %cst_82 = arith.constant 9.99999997E-7 : f32
    %271 = vector.broadcast %cst_82 : f32 to vector<16x1xf32>
    %272 = arith.addf %268, %271 : vector<16x1xf32>
    %273 = math.rsqrt %272 : vector<16x1xf32>
    %274 = vector.broadcast %273 : vector<16x1xf32> to vector<16x32xf32>
    %275 = arith.mulf %270, %274 : vector<16x32xf32>
    %276 = vector.extract_strided_slice %257 {offsets = [0, 0], sizes = [1, 32], strides = [1, 1]} : vector<2x32xf32> to vector<1x32xf32>
    %277 = vector.broadcast %276 : vector<1x32xf32> to vector<16x32xf32>
    %278 = arith.mulf %275, %277 : vector<16x32xf32>
    %279 = vector.extract_strided_slice %257 {offsets = [1, 0], sizes = [1, 32], strides = [1, 1]} : vector<2x32xf32> to vector<1x32xf32>
    %280 = vector.broadcast %279 : vector<1x32xf32> to vector<16x32xf32>
    %281 = arith.addf %278, %280 : vector<16x32xf32>
    %c0_83 = arith.constant 0 : index
    %c0_84 = arith.constant 0 : index
    %282 = vector.load %arg3[%c0_83, %c0_84] : memref<16x32xf32, #tpu.memory_space<vmem>>, vector<16x32xf32>
    tpu.vector_store %arg3[%c0_83, %c0_84], %281 {strides = array<i32>} : memref<16x32xf32, #tpu.memory_space<vmem>>, vector<16x32xf32>,
    return
  }
}

</mosaic_0001>

<bundles_post_ra>
// kernel: encoder_forward.1
= control target key start
LH: loop header
LB: loop body
LE: loop exit
PB: predicated region body
PF: predicated region fallthrough
CT: control target
= control target key end

     0   :  { %8 = vsyncpa [#allocation3], 0  ;;  %s2630_s0 = inlined_call_operand.hbm [shape: f32[16,32], index: 0, kind: input, shape index: {}]   ;;  %s2631_s1 = inlined_call_operand.hbm [shape: bf16[320,128], index: 1, kind: input, shape index: {}]   ;;  %s2632_s2 = inlined_call_operand.hbm [shape: f32[72,128], index: 2, kind: input, shape index: {}]   ;;  %s2633_s3 = inlined_call_operand.hbm [shape: f32[16,32], index: 3, kind: output, shape index: {}]  }
   0x1   :  { %9 = vsyncpa [#allocation6], 0 }
   0x2   :  { %10 = vsyncpa [#allocation4], 0  ;;  %s2278_s12 = smov [#allocation5]   ;;  %s2184_s16 = scalar_lea.hbm %s2631_s1, 2560 }
   0x3   :  { %s28_s13 = sshll.u32 %s2278_s12, 4  ;;  %p2185_p0 = scmp.ne.s32.totalorder %s2631_s1, %s2184_s16  ;;  %s29_s13 = int_to_ptr.vmem [resolvable:$true] %s28_s13 }
   0x4   :  { %p2188_p1 = scmp.lt.u32.totalorder %s2184_s16, %s2631_s1 }
   0x6   :  { %p2190_p2 = pnand %p2188_p1, %p2185_p0 }
   0x8   :  { %2193 = shalt.err (!%p2190_p2)
}
   0x9   :  { %s2194_s21 = scalar_lea.vmem %s29_s13, 2560  ;;  %p2199_p4 = scmp.lt.s32.totalorder %s29_s13, %s29_s13 }
   0xa   :  { %p2195_p3 = scmp.ne.s32.totalorder %s29_s13, %s2194_s21  ;;  %p2200_p5 = scmp.lt.s32.totalorder %s2194_s21, %s2194_s21 }
   0xc   :  { %p2201_p6 = por %p2200_p5, %p2199_p4 }
   0xe   :  { %p2202_p7 = pnand %p2201_p6, %p2195_p3 }
  0x10   :  { %2205 = shalt.err (!%p2202_p7)
}
  0x11   :  { %s2279_s22 = smov 64   ;;  %s2280_s23 = smov 4  }
  0x12   :  { %34 = dma.hbm_to_vmem [thread:$0]  %s2631_s1, 2560, %s29_s13, [#allocation6], %s2279_s22, %s2279_s22, %s2280_s23  }
  0x13   :  { %s2281_s26 = smov [#allocation2]   ;;  %s2206_s30 = scalar_lea.hbm %s2630_s0, 256 }
  0x14   :  { %s16_s27 = sshll.u32 %s2281_s26, 4  ;;  %p2207_p8 = scmp.ne.s32.totalorder %s2630_s0, %s2206_s30  ;;  %s17_s27 = int_to_ptr.vmem [resolvable:$true] %s16_s27 }
  0x15   :  { %p2210_p9 = scmp.lt.u32.totalorder %s2206_s30, %s2630_s0 }
  0x17   :  { %p2212_p10 = pnand %p2210_p9, %p2207_p8 }
  0x19   :  { %2215 = shalt.err (!%p2212_p10)
}
  0x1a   :  { %s2216_s8 = scalar_lea.vmem %s17_s27, 256  ;;  %p2221_p12 = scmp.lt.s32.totalorder %s17_s27, %s17_s27 }
  0x1b   :  { %p2217_p11 = scmp.ne.s32.totalorder %s17_s27, %s2216_s8  ;;  %p2222_p13 = scmp.lt.s32.totalorder %s2216_s8, %s2216_s8 }
  0x1d   :  { %p2223_p0 = por %p2222_p13, %p2221_p12 }
  0x1f   :  { %p2224_p1 = pnand %p2223_p0, %p2217_p11 }
  0x21   :  { %2227 = shalt.err (!%p2224_p1)
}
  0x22   :  { %s2282_s1 = smov 128   ;;  %s2283_s9 = smov 8  }
  0x23   :  { %22 = dma.hbm_to_vmem [thread:$0]  %s2630_s0, 256, %s17_s27, [#allocation3], %s2282_s1, %s2282_s1, %s2283_s9  }
  0x24   :  { %s2284_s12 = smov [#allocation7]   ;;  %s2228_s16 = scalar_lea.hbm %s2632_s2, 1152 }
  0x25   :  { %s40_s13 = sshll.u32 %s2284_s12, 4  ;;  %p2229_p2 = scmp.ne.s32.totalorder %s2632_s2, %s2228_s16  ;;  %s41_s13 = int_to_ptr.vmem [resolvable:$true] %s40_s13 }
  0x26   :  { %p2232_p3 = scmp.lt.u32.totalorder %s2228_s16, %s2632_s2 }
  0x28   :  { %p2234_p4 = pnand %p2232_p3, %p2229_p2 }
  0x2a   :  { %2237 = shalt.err (!%p2234_p4)
}
  0x2b   :  { %s2238_s21 = scalar_lea.vmem %s41_s13, 1152  ;;  %p2243_p6 = scmp.lt.s32.totalorder %s41_s13, %s41_s13 }
  0x2c   :  { %p2239_p5 = scmp.ne.s32.totalorder %s41_s13, %s2238_s21  ;;  %p2244_p7 = scmp.lt.s32.totalorder %s2238_s21, %s2238_s21 }
  0x2e   :  { %p2245_p8 = por %p2244_p7, %p2243_p6 }
  0x30   :  { %p2246_p9 = pnand %p2245_p8, %p2239_p5 }
  0x32   :  { %2249 = shalt.err (!%p2246_p9)
}
  0x33   :  { %46 = dma.hbm_to_vmem [thread:$0]  %s2632_s2, 1152, %s41_s13, [#allocation6], %s2282_s1, %s2282_s1, %s2283_s9  }
  0x34   :  { %2272 = dma.done.wait [#allocation3], 256  }
  0x35   :  { %2273 = vsyncadd [#allocation3], 4294967040 }
  0x36   :  { %2274 = dma.done.wait [#allocation6], 3712  }
  0x37   :  { %2275 = vsyncadd [#allocation6], 4294963584  ;;  %vm60_vm0 = vcmask 261120   ;;  %v57_v0 = vld [vmem:[#allocation2] sm:$0xff]  ;;  %v58_v1 = vld [vmem:[#allocation2 + $0x8] sm:$0xff]  ;;  %v2285_v15 = vmov 0.0   ;;  %v88_v21 = vlaneseq }
  0x38   :  { %v61_v2 = vsel %vm60_vm0, %v57_v0, 0.0  ;;  %v64_v3 = vsel %vm60_vm0, %v58_v1, 0.0  ;;  %v2112_v14 = vld [vmem:[#allocation5] sm:$0xff]   ;;  %1922 = vmatprep.subr.bf16.mxu1 %v2285_v15  ;;  %1936 = vmatprep.subr.bf16.mxu0 %v2285_v15  ;;  %v2113_v16 = vld [vmem:[#allocation5 + $0x8] sm:$0xff]   ;;  %vm2286_vm1 = vmmov 0   ;;  %s2287_s2 = smov 96  }
  0x39   :  { %62 = vadd.xlane.f32.xlu0 %v61_v2  ;;  %1923 = vmatpush3.bf16.msra.mxu1 %v2112_v14  ;;  %v89_v24 = vshrl.u32 %v88_v21, 7  ;;  %v59_v26 = vld [vmem:[#allocation7] sm:$0x3]  ;;  %vm166_vm2 = vcmask 130048   ;;  %vm264_vm3 = vcmask 64512   ;;  %s2288_s24 = smov 80  }
  0x3a   :  { %1926 = vmatprep.mubr.msk.bf16.mxu1 %vm2286_vm1, %v2285_v15  ;;  %1924 = vmatprep.subr.bf16.mxu1 %v2285_v15  ;;  %vm294_vm4 = vcmask 1043456   ;;  %s2289_s25 = smov 112   ;;  %s2290_s26 = smov 48   ;;  %vm861_vm5 = vcmask 523264  }
  0x3b   :  { %1938 = vmatprep.mubr.msk.bf16.mxu0 %vm2286_vm1, %v2285_v15  ;;  %v2368_v25 = vsub.s32 0, %v89_v24  ;;  %v2371_v30 = vsub.s32 1, %v89_v24 }
  0x3d   :  { %65 = vadd.xlane.f32.xlu0 %v64_v3  ;;  %1925 = vmatpush3.bf16.msra.mxu1 %v2113_v16  ;;  %v91_v29 = vrot.slane %v59_v26, %v2368_v25  ;;  %v97_v34 = vrot.slane %v59_v26, %v2371_v30 }
  0x3e   :  { %1930 = vmatprep.subr.bf16.mxu1 %v2285_v15 }
  0xc6   :  { %v63_v4 = vpop.xlane.xlu0 %62 }
  0xc7   :  { %v68_v5 = vmul.f32 0.03125, %v63_v4 }
  0xc9   :  { %v70_v6 = vsub.f32 %v57_v0, %v68_v5 }
  0xca   :  { %v66_v7 = vpop.xlane.xlu0 %65 }
  0xcb   :  { %v69_v8 = vmul.f32 0.03125, %v66_v7  ;;  %v72_v9 = vmul.f32 %v70_v6, %v70_v6 }
  0xcd   :  { %v71_v10 = vsub.f32 %v58_v1, %v69_v8  ;;  %v74_v11 = vsel %vm60_vm0, %v72_v9, 0.0 }
  0xce   :  { %75 = vadd.xlane.f32.xlu1 %v74_v11 }
  0xcf   :  { %v73_v12 = vmul.f32 %v71_v10, %v71_v10 }
  0xd1   :  { %v77_v13 = vsel %vm60_vm0, %v73_v12, 0.0 }
  0xd2   :  { %78 = vadd.xlane.f32.xlu1 %v77_v13 }
 0x15b   :  { %v76_v17 = vpop.xlane.xlu1 %75 }
 0x15c   :  { %v80_v18 = vmul.f32 0.03125, %v76_v17 }
 0x15e   :  { %v82_v19 = vadd.f32 1e-06, %v80_v18 }
 0x15f   :  { %v79_v20 = vpop.xlane.xlu1 %78 }
 0x160   :  { %2132 = vrsqrt.f32 %v82_v19  ;;  %v81_v22 = vmul.f32 0.03125, %v79_v20 }
 0x162   :  { %v83_v23 = vadd.f32 1e-06, %v81_v22 }
 0x164   :  { %2134 = vrsqrt.f32 %v83_v23 }
 0x16a   :  { %v2133_v27 = vpop.eup %2132 }
 0x16b   :  { %v86_v28 = vmul.f32 %v2133_v27, %v70_v6 }
 0x16d   :  { %v92_v33 = vmul.f32 %v91_v29, %v86_v28 }
 0x16e   :  { %v2135_v31 = vpop.eup %2134 }
 0x16f   :  { %v87_v32 = vmul.f32 %v2135_v31, %v71_v10  ;;  %v2374_v36 = vadd.f32 %v97_v34, %v92_v33 }
 0x171   :  { %v93_v35 = vmul.f32 %v91_v29, %v87_v32 }
 0x173   :  { %v2376_v37 = vadd.f32 %v97_v34, %v93_v35 }
 0x175   :  { %v100_v38 = vpack.c.bf16 %v2376_v37, %v2374_v36 }
 0x177   :  { %1927 = vmatmul.mubr.msk.bf16.vlgmr.msra.gmra.mrb[0].mxu1 %vm60_vm0, %v100_v38 }
 0x178   :  { %1932 = vmatprep.mubr.msk.bf16.mxu1 %vm2286_vm1, %v2285_v15 }
 0x24a   :  { %v154_v39 = vpop.f32.mrb[0].mxu1 }
 0x24b   :  { %v2383_v40 = vpack.c.bf16 %v154_v39, %v154_v39  ;;  %v1928_v41 = vpop.f32.mrb[1].mxu1 }
 0x24c   :  { %v157_v42 = vpop.f32.mrb[2].mxu1 }
 0x24d   :  { %v2385_v43 = vpack.c.bf16 %v157_v42, %v157_v42  ;;  %164 = vrot.lane.b32.xlu0 %v2383_v40, %s2287_s2  ;;  %v1929_v44 = vpop.f32.mrb[3].mxu1 }
 0x24f   :  { %214 = vrot.lane.b32.xlu1 %v2385_v43, %s2287_s2 }
 0x2bf   :  { %v165_v45 = vpop.permute.xlu0 %164 }
 0x2c0   :  { %v171_v46 = vsel %vm166_vm2, %v165_v45, 0 }
 0x2c1   :  { %1931 = vmatpush3.bf16.xpose.msra.mxu1 %v171_v46  ;;  %v215_v47 = vpop.permute.xlu1 %214 }
 0x2c2   :  { %v220_v48 = vsel %vm166_vm2, %v215_v47, 0  ;;  %1942 = vmatprep.subr.bf16.mxu1 %v2285_v15 }
 0x2c3   :  { %1937 = vmatpush3.bf16.xpose.msra.mxu0 %v220_v48 }
 0x2c4   :  { %1948 = vmatprep.subr.bf16.mxu0 %v2285_v15 }
 0x2c8   :  { %1933 = vmatmul.mubr.msk.bf16.vlgmr.msra.gmra.mrb[4].mxu1 %vm166_vm2, %v2383_v40 }
 0x2c9   :  { %1944 = vmatprep.mubr.msk.bf16.mxu1 %vm2286_vm1, %v2285_v15 }
 0x2ca   :  { %1939 = vmatmul.mubr.msk.bf16.vlgmr.msra.gmra.mrb[0].mxu0 %vm166_vm2, %v2385_v43 }
 0x2cb   :  { %1950 = vmatprep.mubr.msk.bf16.mxu0 %vm2286_vm1, %v2285_v15 }
 0x39b   :  { %v207_v49 = vpop.f32.mrb[4].mxu1 }
 0x39c   :  { %v262_v50 = vmul.f32 0.25, %v207_v49  ;;  %v1934_v51 = vpop.f32.mrb[5].mxu1 }
 0x39d   :  { %v210_v52 = vpop.f32.mrb[6].mxu1  ;;  %v256_v53 = vpop.f32.mrb[0].mxu0 }
 0x39e   :  { %v263_v54 = vmul.f32 0.25, %v256_v53  ;;  %v1935_v55 = vpop.f32.mrb[7].mxu1  ;;  %v1940_v56 = vpop.f32.mrb[1].mxu0  ;;  %v265_v57 = vsel %vm264_vm3, %v262_v50, -inf }
 0x39f   :  { %v259_v58 = vpop.f32.mrb[2].mxu0  ;;  %266 = vmax.xlane.f32.xlu1 %v265_v57 }
 0x3a0   :  { %v1941_v59 = vpop.f32.mrb[3].mxu0  ;;  %v268_v60 = vsel %vm264_vm3, %v263_v54, -inf }
 0x3a1   :  { %269 = vmax.xlane.f32.xlu0 %v268_v60 }
 0x3b0   :  { %338 = vrot.lane.b32.xlu1 %v2385_v43, %s2279_s22 }
 0x3b4   :  { %391 = vrot.lane.b32.xlu1 %v2383_v40, %s2288_s24 }
 0x42c   :  { %v267_v61 = vpop.xlane.xlu1 %266 }
 0x42d   :  { %v271_v62 = vsub.f32 %v262_v50, %v267_v61 }
 0x42e   :  { %v270_v63 = vpop.xlane.xlu0 %269 }
 0x42f   :  { %v273_v0 = vmul.f32 1.442695, %v271_v62  ;;  %v272_v1 = vsub.f32 %v263_v54, %v270_v63 }
 0x430   :  { %v339_v2 = vpop.permute.xlu1 %338 }
 0x431   :  { %2136 = vpow2.f32 %v273_v0  ;;  %v275_v3 = vmul.f32 1.442695, %v272_v1  ;;  %v344_v4 = vsel %vm294_vm4, %v339_v2, 0 }
 0x432   :  { %1949 = vmatpush3.bf16.msra.mxu0 %v344_v4 }
 0x433   :  { %2138 = vpow2.f32 %v275_v3  ;;  %1960 = vmatprep.subr.bf16.mxu0 %v2285_v15 }
 0x434   :  { %v392_v9 = vpop.permute.xlu1 %391 }
 0x435   :  { %v397_v21 = vsel %vm166_vm2, %v392_v9, 0  ;;  %v2114_v9 = vld [vmem:[#allocation5 + $0x10] sm:$0xff]  }
 0x43b   :  { %v2137_v5 = vpop.eup %2136 }
 0x43c   :  { %v277_v6 = vsel %vm264_vm3, %v2137_v5, 0.0 }
 0x43d   :  { %v2139_v7 = vpop.eup %2138  ;;  %278 = vadd.xlane.f32.xlu0 %v277_v6 }
 0x43e   :  { %v280_v8 = vsel %vm264_vm3, %v2139_v7, 0.0 }
 0x43f   :  { %281 = vadd.xlane.f32.xlu1 %v280_v8 }
 0x450   :  { %441 = vrot.lane.b32.xlu1 %v2385_v43, %s2288_s24 }
 0x453   :  { %289 = vrot.lane.b32.xlu0 %v2383_v40, %s2279_s22 }
 0x454   :  { %439 = vrot.lane.b32.xlu1 %v2385_v43, %s2289_s25 }
 0x457   :  { %389 = vrot.lane.b32.xlu0 %v2383_v40, %s2289_s25 }
 0x4ca   :  { %v279_v10 = vpop.xlane.xlu0 %278 }
 0x4cb   :  { %2140 = vrcp.f32 %v279_v10  ;;  %v2115_v10 = vld [vmem:[#allocation5 + $0x18] sm:$0xff]  }
 0x4cc   :  { %v282_v11 = vpop.xlane.xlu1 %281 }
 0x4cd   :  { %2142 = vrcp.f32 %v282_v11 }
 0x4ce   :  { %v290_v12 = vpop.permute.xlu0 %289 }
 0x4cf   :  { %v296_v13 = vsel %vm294_vm4, %v290_v12, 0 }
 0x4d0   :  { %1943 = vmatpush3.bf16.msra.mxu1 %v296_v13  ;;  %v442_v20 = vpop.permute.xlu1 %441 }
 0x4d1   :  { %1954 = vmatprep.subr.bf16.mxu1 %v2285_v15  ;;  %v447_v23 = vsel %vm166_vm2, %v442_v20, 0 }
 0x4d2   :  { %v390_v24 = vpop.permute.xlu0 %389 }
 0x4d4   :  { %v440_v26 = vpop.permute.xlu1 %439 }
 0x4d5   :  { %v2141_v14 = vpop.eup %2140 }
 0x4d6   :  { %v285_v16 = vmul.f32 %v2141_v14, %v2137_v5 }
 0x4d7   :  { %v2143_v17 = vpop.eup %2142 }
 0x4d8   :  { %v286_v18 = vmul.f32 %v2143_v17, %v2139_v7  ;;  %v287_v19 = vpack.c.bf16 %v285_v16, %v285_v16 }
 0x4da   :  { %1945 = vmatmul.mubr.msk.bf16.vlgmr.msra.gmra.mrb[8].mxu1 %vm264_vm3, %v287_v19  ;;  %v288_v22 = vpack.c.bf16 %v286_v18, %v286_v18 }
 0x4db   :  { %1955 = vmatpush3.bf16.xpose.msra.mxu1 %v397_v21  ;;  %1956 = vmatprep.mubr.msk.bf16.mxu1 %vm2286_vm1, %v2285_v15 }
 0x4dc   :  { %1951 = vmatmul.mubr.msk.bf16.vlgmr.msra.gmra.mrb[4].mxu0 %vm264_vm3, %v288_v22  ;;  %1966 = vmatprep.subr.bf16.mxu1 %v2285_v15 }
 0x4dd   :  { %1961 = vmatpush3.bf16.xpose.msra.mxu0 %v447_v23  ;;  %1962 = vmatprep.mubr.msk.bf16.mxu0 %vm2286_vm1, %v2285_v15 }
 0x4de   :  { %1972 = vmatprep.subr.bf16.mxu0 %v2285_v15 }
 0x4e2   :  { %1957 = vmatmul.mubr.msk.bf16.vlgmr.msra.gmra.mrb[12].mxu1 %vm166_vm2, %v390_v24 }
 0x4e3   :  { %1968 = vmatprep.mubr.msk.bf16.mxu1 %vm2286_vm1, %v2285_v15 }
 0x4e4   :  { %1963 = vmatmul.mubr.msk.bf16.vlgmr.msra.gmra.mrb[8].mxu0 %vm166_vm2, %v440_v26 }
 0x4e5   :  { %1974 = vmatprep.mubr.msk.bf16.mxu0 %vm2286_vm1, %v2285_v15 }
 0x5ad   :  { %v2439_v27 = vpop.f32.mrb[8].mxu1 }
 0x5ae   :  { %v1946_v28 = vpop.f32.mrb[9].mxu1 }
 0x5af   :  { %v335_v29 = vpop.f32.mrb[10].mxu1  ;;  %v2441_v31 = vpop.f32.mrb[4].mxu0 }
 0x5b0   :  { %v388_v32 = vpack.c.bf16 %v2441_v31, %v2439_v27  ;;  %v1947_v33 = vpop.f32.mrb[11].mxu1  ;;  %v1952_v34 = vpop.f32.mrb[5].mxu0 }
 0x5b1   :  { %v383_v35 = vpop.f32.mrb[6].mxu0 }
 0x5b2   :  { %v1953_v38 = vpop.f32.mrb[7].mxu0 }
 0x5b5   :  { %v433_v39 = vpop.f32.mrb[12].mxu1 }
 0x5b6   :  { %v489_v41 = vmul.f32 0.25, %v433_v39  ;;  %v1958_v42 = vpop.f32.mrb[13].mxu1 }
 0x5b7   :  { %v436_v44 = vpop.f32.mrb[14].mxu1  ;;  %v483_v45 = vpop.f32.mrb[8].mxu0 }
 0x5b8   :  { %v490_v46 = vmul.f32 0.25, %v483_v45  ;;  %v1959_v47 = vpop.f32.mrb[15].mxu1  ;;  %v1964_v48 = vpop.f32.mrb[9].mxu0  ;;  %v491_v49 = vsel %vm264_vm3, %v489_v41, -inf }
 0x5b9   :  { %v486_v50 = vpop.f32.mrb[10].mxu0  ;;  %492 = vmax.xlane.f32.xlu0 %v491_v49 }
 0x5ba   :  { %v1965_v51 = vpop.f32.mrb[11].mxu0  ;;  %v494_v52 = vsel %vm264_vm3, %v490_v46, -inf  ;;  %v2116_v50 = vld [vmem:[#allocation5 + $0x20] sm:$0xff]  }
 0x5bb   :  { %495 = vmax.xlane.f32.xlu1 %v494_v52  ;;  %v2118_v51 = vld [vmem:[#allocation5 + $0x30] sm:$0xff]   ;;  %v2119_v52 = vld [vmem:[#allocation5 + $0x38] sm:$0xff]  }
 0x5cc   :  { %563 = vrot.lane.b32.xlu1 %v2385_v43, %s2290_s26 }
 0x646   :  { %v493_v53 = vpop.xlane.xlu0 %492 }
 0x647   :  { %v497_v54 = vsub.f32 %v489_v41, %v493_v53 }
 0x648   :  { %v496_v55 = vpop.xlane.xlu1 %495 }
 0x649   :  { %v499_v56 = vmul.f32 1.442695, %v497_v54  ;;  %v498_v57 = vsub.f32 %v490_v46, %v496_v55 }
 0x64b   :  { %2144 = vpow2.f32 %v499_v56  ;;  %v501_v58 = vmul.f32 1.442695, %v498_v57 }
 0x64c   :  { %v564_v59 = vpop.permute.xlu1 %563 }
 0x64d   :  { %2146 = vpow2.f32 %v501_v58  ;;  %v569_v60 = vsel %vm294_vm4, %v564_v59, 0  ;;  %v716_v59 = vld [vmem:[#allocation7 + $0x8] sm:$0x3] }
 0x64e   :  { %1973 = vmatpush3.bf16.msra.mxu0 %v569_v60  ;;  %v746_v60 = vrot.slane %v716_v59, %v2368_v25 }
 0x64f   :  { %1984 = vmatprep.subr.bf16.mxu0 %v2285_v15 }
 0x655   :  { %v2145_v61 = vpop.eup %2144 }
 0x656   :  { %v503_v62 = vsel %vm264_vm3, %v2145_v61, 0.0 }
 0x657   :  { %v2147_v63 = vpop.eup %2146  ;;  %504 = vadd.xlane.f32.xlu0 %v503_v62 }
 0x658   :  { %v506_v43 = vsel %vm264_vm3, %v2147_v63, 0.0 }
 0x65b   :  { %507 = vadd.xlane.f32.xlu0 %v506_v43 }
 0x671   :  { %515 = vrot.lane.b32.xlu0 %v2383_v40, %s2290_s26 }
 0x6e4   :  { %v505_v0 = vpop.xlane.xlu0 %504 }
 0x6e5   :  { %2148 = vrcp.f32 %v505_v0 }
 0x6e8   :  { %v508_v1 = vpop.xlane.xlu0 %507 }
 0x6e9   :  { %2150 = vrcp.f32 %v508_v1  ;;  %v752_v1 = vrot.slane %v716_v59, %v2371_v30 }
 0x6ec   :  { %v516_v2 = vpop.permute.xlu0 %515 }
 0x6ed   :  { %v521_v3 = vsel %vm294_vm4, %v516_v2, 0 }
 0x6ee   :  { %1967 = vmatpush3.bf16.msra.mxu1 %v521_v3 }
 0x6ef   :  { %v2149_v4 = vpop.eup %2148  ;;  %1978 = vmatprep.subr.bf16.mxu1 %v2285_v15 }
 0x6f0   :  { %v511_v5 = vmul.f32 %v2149_v4, %v2145_v61 }
 0x6f2   :  { %v513_v6 = vpack.c.bf16 %v511_v5, %v511_v5 }
 0x6f3   :  { %v2151_v7 = vpop.eup %2150 }
 0x6f4   :  { %v512_v8 = vmul.f32 %v2151_v7, %v2147_v63  ;;  %1969 = vmatmul.mubr.msk.bf16.vlgmr.msra.gmra.mrb[16].mxu1 %vm264_vm3, %v513_v6  ;;  %v2120_v6 = vld [vmem:[#allocation5 + $0x40] sm:$0xff]   ;;  %v2121_v7 = vld [vmem:[#allocation5 + $0x48] sm:$0xff]  }
 0x6f5   :  { %1980 = vmatprep.mubr.msk.bf16.mxu1 %vm2286_vm1, %v2285_v15  ;;  %1979 = vmatpush3.bf16.msra.mxu1 %v2115_v10 }
 0x6f6   :  { %v514_v40 = vpack.c.bf16 %v512_v8, %v512_v8  ;;  %1990 = vmatprep.subr.bf16.mxu1 %v2285_v15  ;;  %v1825_v8 = vld [vmem:[#allocation7 + $0x10] ss:$0 sm:$0xff] }
 0x6f8   :  { %1975 = vmatmul.mubr.msk.bf16.vlgmr.msra.gmra.mrb[12].mxu0 %vm264_vm3, %v514_v40 }
 0x6f9   :  { %1985 = vmatpush3.bf16.msra.mxu0 %v2114_v9  ;;  %1986 = vmatprep.mubr.msk.bf16.mxu0 %vm2286_vm1, %v2285_v15 }
 0x6fa   :  { %1998 = vmatprep.subr.bf16.mxu0 %v2285_v15 }
 0x700   :  { %1987 = vmatmul.mubr.msk.bf16.vlgmr.msra.gmra.mrb[16].mxu0 %vm166_vm2, %v388_v32 }
 0x701   :  { %2006 = vmatprep.mubr.msk.bf16.mxu0 %vm2286_vm1, %v2285_v15  ;;  %1999 = vmatpush3.bf16.msra.mxu0 %v2118_v51  ;;  %v908_v51 = vld [vmem:[#allocation7 + $0x20] sm:$0x3] }
 0x702   :  { %2000 = vmatprep.subr.bf16.mxu0 %v2285_v15 }
 0x705   :  { %2001 = vmatpush3.bf16.msra.mxu0 %v2119_v52  ;;  %v938_v52 = vrot.slane %v908_v51, %v2368_v25 }
 0x706   :  { %2002 = vmatprep.subr.bf16.mxu0 %v2285_v15 }
 0x709   :  { %2003 = vmatpush3.bf16.msra.mxu0 %v2120_v6 }
 0x70a   :  { %2004 = vmatprep.subr.bf16.mxu0 %v2285_v15 }
 0x70d   :  { %2005 = vmatpush3.bf16.msra.mxu0 %v2121_v7 }
 0x70e   :  { %2024 = vmatprep.subr.bf16.mxu0 %v2285_v15 }
 0x7c7   :  { %v557_v11 = vpop.f32.mrb[16].mxu1 }
 0x7c8   :  { %v1970_v12 = vpop.f32.mrb[17].mxu1 }
 0x7c9   :  { %v560_v13 = vpop.f32.mrb[18].mxu1 }
 0x7ca   :  { %v1971_v14 = vpop.f32.mrb[19].mxu1 }
 0x7cb   :  { %v605_v16 = vpop.f32.mrb[12].mxu0 }
 0x7cc   :  { %v613_v17 = vpack.c.bf16 %v605_v16, %v557_v11  ;;  %v1976_v18 = vpop.f32.mrb[13].mxu0 }
 0x7cd   :  { %v608_v19 = vpop.f32.mrb[14].mxu0  ;;  %v1829_v18 = vld [vmem:[#allocation7 + $0x18] ss:$0 sm:$0xff] }
 0x7ce   :  { %v1977_v20 = vpop.f32.mrb[15].mxu0  ;;  %1981 = vmatmul.mubr.msk.bf16.vlgmr.msra.gmra.mrb[20].mxu1 %vm166_vm2, %v613_v17 }
 0x7cf   :  { %1994 = vmatprep.mubr.msk.bf16.mxu1 %vm2286_vm1, %v2285_v15  ;;  %1991 = vmatpush3.bf16.msra.mxu1 %v2116_v50 }
 0x7d0   :  { %1992 = vmatprep.subr.bf16.mxu1 %v2285_v15 }
 0x7d3   :  { %v707_v21 = vpop.f32.mrb[16].mxu0 }
 0x7d4   :  { %v1988_v22 = vpop.f32.mrb[17].mxu0 }
 0x7d5   :  { %v710_v23 = vpop.f32.mrb[18].mxu0 }
 0x7d6   :  { %v1989_v24 = vpop.f32.mrb[19].mxu0 }
 0x8a1   :  { %v657_v26 = vpop.f32.mrb[20].mxu1 }
 0x8a2   :  { %v708_v27 = vadd.f32 %v707_v21, %v657_v26  ;;  %v1982_v28 = vpop.f32.mrb[21].mxu1 }
 0x8a3   :  { %v660_v29 = vpop.f32.mrb[22].mxu1 }
 0x8a4   :  { %v711_v31 = vadd.f32 %v710_v23, %v660_v29  ;;  %v1983_v32 = vpop.f32.mrb[23].mxu1  ;;  %v714_v33 = vadd.f32 %v708_v27, %v2374_v36 }
 0x8a6   :  { %v717_v34 = vsel %vm60_vm0, %v714_v33, 0.0  ;;  %v715_v35 = vadd.f32 %v711_v31, %v2376_v37  ;;  %v2117_v37 = vld [vmem:[#allocation5 + $0x28] sm:$0xff]  }
 0x8a7   :  { %718 = vadd.xlane.f32.xlu1 %v717_v34  ;;  %1993 = vmatpush3.bf16.msra.mxu1 %v2117_v37 }
 0x8a8   :  { %v720_v38 = vsel %vm60_vm0, %v715_v35, 0.0  ;;  %2010 = vmatprep.subr.bf16.mxu1 %v2285_v15 }
 0x8a9   :  { %721 = vadd.xlane.f32.xlu0 %v720_v38 }
 0x934   :  { %v719_v39 = vpop.xlane.xlu1 %718 }
 0x935   :  { %v723_v41 = vmul.f32 0.03125, %v719_v39 }
 0x936   :  { %v722_v42 = vpop.xlane.xlu0 %721 }
 0x937   :  { %v725_v44 = vsub.f32 %v714_v33, %v723_v41  ;;  %v724_v45 = vmul.f32 0.03125, %v722_v42 }
 0x939   :  { %v726_v46 = vsub.f32 %v715_v35, %v724_v45  ;;  %v727_v47 = vmul.f32 %v725_v44, %v725_v44  ;;  %v2122_v45 = vld [vmem:[#allocation5 + $0x50] sm:$0xff]  }
 0x93b   :  { %v729_v48 = vsel %vm60_vm0, %v727_v47, 0.0  ;;  %v728_v49 = vmul.f32 %v726_v46, %v726_v46 }
 0x93c   :  { %730 = vadd.xlane.f32.xlu0 %v729_v48 }
 0x93d   :  { %v732_v36 = vsel %vm60_vm0, %v728_v49, 0.0 }
 0x93e   :  { %733 = vadd.xlane.f32.xlu1 %v732_v36 }
 0x9c9   :  { %v731_v53 = vpop.xlane.xlu0 %730 }
 0x9ca   :  { %v735_v54 = vmul.f32 0.03125, %v731_v53 }
 0x9cb   :  { %v734_v55 = vpop.xlane.xlu1 %733 }
 0x9cc   :  { %v737_v56 = vadd.f32 1e-06, %v735_v54  ;;  %v736_v57 = vmul.f32 0.03125, %v734_v55 }
 0x9ce   :  { %2152 = vrsqrt.f32 %v737_v56  ;;  %v738_v58 = vadd.f32 1e-06, %v736_v57 }
 0x9d0   :  { %2154 = vrsqrt.f32 %v738_v58  ;;  %v944_v58 = vrot.slane %v908_v51, %v2371_v30 }
 0x9d8   :  { %v2153_v61 = vpop.eup %2152 }
 0x9d9   :  { %v741_v62 = vmul.f32 %v2153_v61, %v725_v44 }
 0x9da   :  { %v2155_v63 = vpop.eup %2154 }
 0x9db   :  { %v747_v43 = vmul.f32 %v746_v60, %v741_v62  ;;  %v742_v0 = vmul.f32 %v2155_v63, %v726_v46  ;;  %v2123_v46 = vld [vmem:[#allocation5 + $0x58] sm:$0xff]  }
 0x9dd   :  { %v748_v2 = vmul.f32 %v746_v60, %v742_v0  ;;  %v753_v3 = vadd.f32 %v752_v1, %v747_v43 }
 0x9df   :  { %v754_v4 = vadd.f32 %v752_v1, %v748_v2 }
 0x9e1   :  { %v769_v5 = vpack.c.bf16 %v754_v4, %v753_v3 }
 0x9e3   :  { %1995 = vmatmul.mubr.msk.bf16.vlgmr.msra.gmra.mrb[24].mxu1 %vm60_vm0, %v769_v5 }
 0x9e4   :  { %2014 = vmatprep.mubr.msk.bf16.mxu1 %vm2286_vm1, %v2285_v15  ;;  %2011 = vmatpush3.bf16.msra.mxu1 %v2122_v45 }
 0x9e5   :  { %2012 = vmatprep.subr.bf16.mxu1 %v2285_v15 }
 0x9e8   :  { %2013 = vmatpush3.bf16.msra.mxu1 %v2123_v46 }
 0x9e9   :  { %2018 = vmatprep.subr.bf16.mxu1 %v2285_v15 }
 0xab6   :  { %v823_v9 = vpop.f32.mrb[24].mxu1 }
 0xab7   :  { %v824_v40 = vadd.f32 %v1825_v8, %v823_v9  ;;  %v1996_v10 = vpop.f32.mrb[25].mxu1 }
 0xab8   :  { %v826_v11 = vpop.f32.mrb[26].mxu1 }
 0xab9   :  { %v827_v12 = vadd.f32 %v1825_v8, %v826_v11  ;;  %v1997_v13 = vpop.f32.mrb[27].mxu1  ;;  %v830_v14 = vmax.f32 %v824_v40, 0.0 }
 0xabb   :  { %v831_v16 = vmax.f32 %v827_v12, 0.0 }
 0xabd   :  { %v832_v17 = vpack.c.bf16 %v831_v16, %v830_v14 }
 0xabf   :  { %2007 = vmatmul.mubr.msk.bf16.vlgmr.msra.gmra.mrb[20].mxu0 %vm861_vm5, %v832_v17 }
 0xac0   :  { %2026 = vmatprep.mubr.msk.bf16.mxu0 %vm2286_vm1, %v2285_v15 }
 0xb92   :  { %v899_v19 = vpop.f32.mrb[20].mxu0 }
 0xb93   :  { %v900_v20 = vadd.f32 %v1829_v18, %v899_v19  ;;  %v2008_v21 = vpop.f32.mrb[21].mxu0 }
 0xb94   :  { %v902_v22 = vpop.f32.mrb[22].mxu0 }
 0xb95   :  { %v903_v23 = vadd.f32 %v1829_v18, %v902_v22  ;;  %v2009_v24 = vpop.f32.mrb[23].mxu0  ;;  %v906_v26 = vadd.f32 %v900_v20, %v753_v3 }
 0xb97   :  { %v909_v27 = vsel %vm60_vm0, %v906_v26, 0.0  ;;  %v907_v28 = vadd.f32 %v903_v23, %v754_v4 }
 0xb98   :  { %910 = vadd.xlane.f32.xlu0 %v909_v27 }
 0xb99   :  { %v912_v29 = vsel %vm60_vm0, %v907_v28, 0.0 }
 0xb9a   :  { %913 = vadd.xlane.f32.xlu1 %v912_v29 }
 0xc25   :  { %v911_v31 = vpop.xlane.xlu0 %910 }
 0xc26   :  { %v915_v32 = vmul.f32 0.03125, %v911_v31 }
 0xc27   :  { %v914_v33 = vpop.xlane.xlu1 %913 }
 0xc28   :  { %v917_v34 = vsub.f32 %v906_v26, %v915_v32  ;;  %v916_v35 = vmul.f32 0.03125, %v914_v33 }
 0xc2a   :  { %v918_v38 = vsub.f32 %v907_v28, %v916_v35  ;;  %v919_v39 = vmul.f32 %v917_v34, %v917_v34 }
 0xc2c   :  { %v921_v41 = vsel %vm60_vm0, %v919_v39, 0.0  ;;  %v920_v42 = vmul.f32 %v918_v38, %v918_v38 }
 0xc2d   :  { %922 = vadd.xlane.f32.xlu0 %v921_v41 }
 0xc2e   :  { %v924_v44 = vsel %vm60_vm0, %v920_v42, 0.0 }
 0xc2f   :  { %925 = vadd.xlane.f32.xlu1 %v924_v44 }
 0xcba   :  { %v923_v47 = vpop.xlane.xlu0 %922 }
 0xcbb   :  { %v927_v48 = vmul.f32 0.03125, %v923_v47 }
 0xcbc   :  { %v926_v49 = vpop.xlane.xlu1 %925 }
 0xcbd   :  { %v929_v36 = vadd.f32 1e-06, %v927_v48  ;;  %v928_v50 = vmul.f32 0.03125, %v926_v49 }
 0xcbf   :  { %2156 = vrsqrt.f32 %v929_v36  ;;  %v930_v37 = vadd.f32 1e-06, %v928_v50 }
 0xcc1   :  { %2158 = vrsqrt.f32 %v930_v37 }
 0xcc9   :  { %v2157_v53 = vpop.eup %2156 }
 0xcca   :  { %v933_v54 = vmul.f32 %v2157_v53, %v917_v34 }
 0xccb   :  { %v2159_v55 = vpop.eup %2158 }
 0xccc   :  { %v939_v56 = vmul.f32 %v938_v52, %v933_v54  ;;  %v934_v57 = vmul.f32 %v2159_v55, %v918_v38 }
 0xcce   :  { %v940_v59 = vmul.f32 %v938_v52, %v934_v57  ;;  %v2499_v60 = vadd.f32 %v944_v58, %v939_v56 }
 0xcd0   :  { %v2501_v61 = vadd.f32 %v944_v58, %v940_v59 }
 0xcd2   :  { %v947_v62 = vpack.c.bf16 %v2501_v61, %v2499_v60 }
 0xcd4   :  { %2015 = vmatmul.mubr.msk.bf16.vlgmr.msra.gmra.mrb[28].mxu1 %vm60_vm0, %v947_v62 }
 0xcd5   :  { %2020 = vmatprep.mubr.msk.bf16.mxu1 %vm2286_vm1, %v2285_v15 }
 0xda7   :  { %v1001_v63 = vpop.f32.mrb[28].mxu1 }
 0xda8   :  { %v2508_v43 = vpack.c.bf16 %v1001_v63, %v1001_v63  ;;  %v2016_v0 = vpop.f32.mrb[29].mxu1 }
 0xda9   :  { %v1004_v1 = vpop.f32.mrb[30].mxu1 }
 0xdaa   :  { %v2510_v2 = vpack.c.bf16 %v1004_v1, %v1004_v1  ;;  %1011 = vrot.lane.b32.xlu0 %v2508_v43, %s2287_s2  ;;  %v2017_v3 = vpop.f32.mrb[31].mxu1 }
 0xdac   :  { %1060 = vrot.lane.b32.xlu1 %v2510_v2, %s2287_s2 }
 0xe1c   :  { %v1012_v4 = vpop.permute.xlu0 %1011 }
 0xe1d   :  { %v1017_v5 = vsel %vm166_vm2, %v1012_v4, 0 }
 0xe1e   :  { %2019 = vmatpush3.bf16.xpose.msra.mxu1 %v1017_v5  ;;  %v1061_v6 = vpop.permute.xlu1 %1060 }
 0xe1f   :  { %v1066_v7 = vsel %vm166_vm2, %v1061_v6, 0  ;;  %2030 = vmatprep.subr.bf16.mxu1 %v2285_v15 }
 0xe20   :  { %2025 = vmatpush3.bf16.xpose.msra.mxu0 %v1066_v7 }
 0xe21   :  { %2036 = vmatprep.subr.bf16.mxu0 %v2285_v15 }
 0xe25   :  { %2021 = vmatmul.mubr.msk.bf16.vlgmr.msra.gmra.mrb[32].mxu1 %vm166_vm2, %v2508_v43 }
 0xe26   :  { %2032 = vmatprep.mubr.msk.bf16.mxu1 %vm2286_vm1, %v2285_v15 }
 0xe27   :  { %2027 = vmatmul.mubr.msk.bf16.vlgmr.msra.gmra.mrb[24].mxu0 %vm166_vm2, %v2510_v2 }
 0xe28   :  { %2038 = vmatprep.mubr.msk.bf16.mxu0 %vm2286_vm1, %v2285_v15 }
 0xef8   :  { %v1053_v8 = vpop.f32.mrb[32].mxu1 }
 0xef9   :  { %v1108_v9 = vmul.f32 0.25, %v1053_v8  ;;  %v2022_v40 = vpop.f32.mrb[33].mxu1 }
 0xefa   :  { %v1056_v10 = vpop.f32.mrb[34].mxu1  ;;  %v1102_v11 = vpop.f32.mrb[24].mxu0 }
 0xefb   :  { %v1109_v12 = vmul.f32 0.25, %v1102_v11  ;;  %v2023_v13 = vpop.f32.mrb[35].mxu1  ;;  %v2028_v14 = vpop.f32.mrb[25].mxu0  ;;  %v1110_v16 = vsel %vm264_vm3, %v1108_v9, -inf }
 0xefc   :  { %v1105_v17 = vpop.f32.mrb[26].mxu0  ;;  %1111 = vmax.xlane.f32.xlu1 %v1110_v16 }
 0xefd   :  { %v2029_v18 = vpop.f32.mrb[27].mxu0  ;;  %v1113_v19 = vsel %vm264_vm3, %v1109_v12, -inf }
 0xefe   :  { %1114 = vmax.xlane.f32.xlu0 %v1113_v19 }
 0xf0d   :  { %1182 = vrot.lane.b32.xlu1 %v2510_v2, %s2279_s22 }
 0xf11   :  { %1235 = vrot.lane.b32.xlu1 %v2508_v43, %s2288_s24 }
 0xf89   :  { %v1112_v20 = vpop.xlane.xlu1 %1111 }
 0xf8a   :  { %v1116_v21 = vsub.f32 %v1108_v9, %v1112_v20 }
 0xf8b   :  { %v1115_v22 = vpop.xlane.xlu0 %1114 }
 0xf8c   :  { %v1118_v23 = vmul.f32 1.442695, %v1116_v21  ;;  %v1117_v24 = vsub.f32 %v1109_v12, %v1115_v22 }
 0xf8d   :  { %v1183_v26 = vpop.permute.xlu1 %1182 }
 0xf8e   :  { %2160 = vpow2.f32 %v1118_v23  ;;  %v1120_v27 = vmul.f32 1.442695, %v1117_v24  ;;  %v1188_v28 = vsel %vm294_vm4, %v1183_v26, 0 }
 0xf8f   :  { %2037 = vmatpush3.bf16.msra.mxu0 %v1188_v28 }
 0xf90   :  { %2162 = vpow2.f32 %v1120_v27  ;;  %2048 = vmatprep.subr.bf16.mxu0 %v2285_v15 }
 0xf91   :  { %v1236_v34 = vpop.permute.xlu1 %1235 }
 0xf92   :  { %v1241_v49 = vsel %vm166_vm2, %v1236_v34, 0  ;;  %v2124_v34 = vld [vmem:[#allocation5 + $0x60] sm:$0xff]  }
 0xf98   :  { %v2161_v29 = vpop.eup %2160 }
 0xf99   :  { %v1122_v31 = vsel %vm264_vm3, %v2161_v29, 0.0 }
 0xf9a   :  { %v2163_v32 = vpop.eup %2162  ;;  %1123 = vadd.xlane.f32.xlu0 %v1122_v31 }
 0xf9b   :  { %v1125_v33 = vsel %vm264_vm3, %v2163_v32, 0.0 }
 0xf9c   :  { %1126 = vadd.xlane.f32.xlu1 %v1125_v33 }
 0xfad   :  { %1285 = vrot.lane.b32.xlu1 %v2510_v2, %s2288_s24 }
 0xfb0   :  { %1134 = vrot.lane.b32.xlu0 %v2508_v43, %s2279_s22  ;;  %s2291_s22 = smov [#allocation8]  }
 0xfb1   :  { %1283 = vrot.lane.b32.xlu1 %v2510_v2, %s2289_s25  ;;  %s1797_s27 = sshll.u32 %s2291_s22, 4  ;;  %s1798_s27 = int_to_ptr.vmem [resolvable:$true] %s1797_s27 }
 0xfb2   :  { %s2250_s28 = scalar_lea.vmem %s1798_s27, 256  ;;  %p2255_p11 = scmp.lt.s32.totalorder %s1798_s27, %s1798_s27 }
 0xfb3   :  { %p2251_p10 = scmp.ne.s32.totalorder %s1798_s27, %s2250_s28  ;;  %p2256_p12 = scmp.lt.s32.totalorder %s2250_s28, %s2250_s28 }
 0xfb4   :  { %1233 = vrot.lane.b32.xlu0 %v2508_v43, %s2289_s25 }
 0xfb5   :  { %p2257_p13 = por %p2256_p12, %p2255_p11 }
 0xfb7   :  { %p2258_p0 = pnand %p2257_p13, %p2251_p10 }
0x1027   :  { %v1124_v35 = vpop.xlane.xlu0 %1123 }
0x1028   :  { %2164 = vrcp.f32 %v1124_v35  ;;  %v2125_v35 = vld [vmem:[#allocation5 + $0x68] sm:$0xff]  }
0x1029   :  { %v1127_v38 = vpop.xlane.xlu1 %1126 }
0x102a   :  { %2166 = vrcp.f32 %v1127_v38 }
0x102b   :  { %v1135_v39 = vpop.permute.xlu0 %1134 }
0x102c   :  { %v1140_v41 = vsel %vm294_vm4, %v1135_v39, 0 }
0x102d   :  { %2031 = vmatpush3.bf16.msra.mxu1 %v1140_v41  ;;  %v1286_v48 = vpop.permute.xlu1 %1285 }
0x102e   :  { %2042 = vmatprep.subr.bf16.mxu1 %v2285_v15  ;;  %v1291_v50 = vsel %vm166_vm2, %v1286_v48, 0 }
0x102f   :  { %v1234_v37 = vpop.permute.xlu0 %1233 }
0x1031   :  { %v1284_v51 = vpop.permute.xlu1 %1283 }
0x1032   :  { %v2165_v42 = vpop.eup %2164 }
0x1033   :  { %v1130_v44 = vmul.f32 %v2165_v42, %v2161_v29 }
0x1034   :  { %v2167_v45 = vpop.eup %2166 }
0x1035   :  { %v1131_v46 = vmul.f32 %v2167_v45, %v2163_v32  ;;  %v1132_v47 = vpack.c.bf16 %v1130_v44, %v1130_v44 }
0x1037   :  { %2033 = vmatmul.mubr.msk.bf16.vlgmr.msra.gmra.mrb[36].mxu1 %vm264_vm3, %v1132_v47  ;;  %v1133_v36 = vpack.c.bf16 %v1131_v46, %v1131_v46 }
0x1038   :  { %2043 = vmatpush3.bf16.xpose.msra.mxu1 %v1241_v49  ;;  %2044 = vmatprep.mubr.msk.bf16.mxu1 %vm2286_vm1, %v2285_v15 }
0x1039   :  { %2039 = vmatmul.mubr.msk.bf16.vlgmr.msra.gmra.mrb[28].mxu0 %vm264_vm3, %v1133_v36  ;;  %2054 = vmatprep.subr.bf16.mxu1 %v2285_v15 }
0x103a   :  { %2049 = vmatpush3.bf16.xpose.msra.mxu0 %v1291_v50  ;;  %2050 = vmatprep.mubr.msk.bf16.mxu0 %vm2286_vm1, %v2285_v15 }
0x103b   :  { %2060 = vmatprep.subr.bf16.mxu0 %v2285_v15 }
0x103f   :  { %2045 = vmatmul.mubr.msk.bf16.vlgmr.msra.gmra.mrb[40].mxu1 %vm166_vm2, %v1234_v37 }
0x1040   :  { %2056 = vmatprep.mubr.msk.bf16.mxu1 %vm2286_vm1, %v2285_v15 }
0x1041   :  { %2051 = vmatmul.mubr.msk.bf16.vlgmr.msra.gmra.mrb[32].mxu0 %vm166_vm2, %v1284_v51 }
0x1042   :  { %2062 = vmatprep.mubr.msk.bf16.mxu0 %vm2286_vm1, %v2285_v15 }
0x110a   :  { %v2564_v52 = vpop.f32.mrb[36].mxu1 }
0x110b   :  { %v2034_v53 = vpop.f32.mrb[37].mxu1 }
0x110c   :  { %v1179_v54 = vpop.f32.mrb[38].mxu1  ;;  %v1224_v55 = vpop.f32.mrb[28].mxu0 }
0x110d   :  { %v1232_v56 = vpack.c.bf16 %v1224_v55, %v2564_v52  ;;  %v2035_v57 = vpop.f32.mrb[39].mxu1  ;;  %v2040_v58 = vpop.f32.mrb[29].mxu0 }
0x110e   :  { %v1227_v59 = vpop.f32.mrb[30].mxu0 }
0x110f   :  { %v2041_v62 = vpop.f32.mrb[31].mxu0 }
0x1112   :  { %v1277_v63 = vpop.f32.mrb[40].mxu1 }
0x1113   :  { %v1333_v0 = vmul.f32 0.25, %v1277_v63  ;;  %v2046_v1 = vpop.f32.mrb[41].mxu1 }
0x1114   :  { %v1280_v3 = vpop.f32.mrb[42].mxu1  ;;  %v1327_v4 = vpop.f32.mrb[32].mxu0 }
0x1115   :  { %v1334_v5 = vmul.f32 0.25, %v1327_v4  ;;  %v2047_v6 = vpop.f32.mrb[43].mxu1  ;;  %v2052_v7 = vpop.f32.mrb[33].mxu0  ;;  %v1335_v8 = vsel %vm264_vm3, %v1333_v0, -inf }
0x1116   :  { %v1330_v9 = vpop.f32.mrb[34].mxu0  ;;  %1336 = vmax.xlane.f32.xlu0 %v1335_v8 }
0x1117   :  { %v2053_v40 = vpop.f32.mrb[35].mxu0  ;;  %v1338_v10 = vsel %vm264_vm3, %v1334_v5, -inf  ;;  %v2126_v9 = vld [vmem:[#allocation5 + $0x70] sm:$0xff]  }
0x1118   :  { %1339 = vmax.xlane.f32.xlu1 %v1338_v10  ;;  %v2128_v40 = vld [vmem:[#allocation5 + $0x80] sm:$0xff]   ;;  %v2129_v10 = vld [vmem:[#allocation5 + $0x88] sm:$0xff]  }
0x1129   :  { %1407 = vrot.lane.b32.xlu1 %v2510_v2, %s2290_s26 }
0x11a3   :  { %v1337_v11 = vpop.xlane.xlu0 %1336 }
0x11a4   :  { %v1341_v12 = vsub.f32 %v1333_v0, %v1337_v11 }
0x11a5   :  { %v1340_v13 = vpop.xlane.xlu1 %1339 }
0x11a6   :  { %v1343_v14 = vmul.f32 1.442695, %v1341_v12  ;;  %v1342_v16 = vsub.f32 %v1334_v5, %v1340_v13 }
0x11a8   :  { %2168 = vpow2.f32 %v1343_v14  ;;  %v1345_v17 = vmul.f32 1.442695, %v1342_v16 }
0x11a9   :  { %v1408_v18 = vpop.permute.xlu1 %1407 }
0x11aa   :  { %2170 = vpow2.f32 %v1345_v17  ;;  %v1413_v19 = vsel %vm294_vm4, %v1408_v18, 0  ;;  %v1560_v18 = vld [vmem:[#allocation7 + $0x28] sm:$0x3] }
0x11ab   :  { %2061 = vmatpush3.bf16.msra.mxu0 %v1413_v19  ;;  %v1590_v19 = vrot.slane %v1560_v18, %v2368_v25 }
0x11ac   :  { %2072 = vmatprep.subr.bf16.mxu0 %v2285_v15 }
0x11b2   :  { %v2169_v20 = vpop.eup %2168 }
0x11b3   :  { %v1347_v21 = vsel %vm264_vm3, %v2169_v20, 0.0 }
0x11b4   :  { %v2171_v22 = vpop.eup %2170  ;;  %1348 = vadd.xlane.f32.xlu0 %v1347_v21 }
0x11b5   :  { %v1350_v2 = vsel %vm264_vm3, %v2171_v22, 0.0 }
0x11b8   :  { %1351 = vadd.xlane.f32.xlu0 %v1350_v2 }
0x11ce   :  { %1359 = vrot.lane.b32.xlu0 %v2508_v43, %s2290_s26 }
0x1241   :  { %v1349_v23 = vpop.xlane.xlu0 %1348 }
0x1242   :  { %2172 = vrcp.f32 %v1349_v23 }
0x1245   :  { %v1352_v24 = vpop.xlane.xlu0 %1351 }
0x1246   :  { %2174 = vrcp.f32 %v1352_v24  ;;  %v1596_v24 = vrot.slane %v1560_v18, %v2371_v30 }
0x1249   :  { %v1360_v26 = vpop.permute.xlu0 %1359 }
0x124a   :  { %v1365_v27 = vsel %vm294_vm4, %v1360_v26, 0 }
0x124b   :  { %2055 = vmatpush3.bf16.msra.mxu1 %v1365_v27 }
0x124c   :  { %v2173_v28 = vpop.eup %2172  ;;  %2066 = vmatprep.subr.bf16.mxu1 %v2285_v15 }
0x124d   :  { %v1355_v29 = vmul.f32 %v2173_v28, %v2169_v20 }
0x124f   :  { %v1357_v31 = vpack.c.bf16 %v1355_v29, %v1355_v29 }
0x1250   :  { %v2175_v32 = vpop.eup %2174 }
0x1251   :  { %v1356_v33 = vmul.f32 %v2175_v32, %v2171_v22  ;;  %2057 = vmatmul.mubr.msk.bf16.vlgmr.msra.gmra.mrb[44].mxu1 %vm264_vm3, %v1357_v31  ;;  %v2130_v31 = vld [vmem:[#allocation5 + $0x90] sm:$0xff]   ;;  %v2131_v32 = vld [vmem:[#allocation5 + $0x98] sm:$0xff]  }
0x1252   :  { %2068 = vmatprep.mubr.msk.bf16.mxu1 %vm2286_vm1, %v2285_v15  ;;  %2067 = vmatpush3.bf16.msra.mxu1 %v2125_v35 }
0x1253   :  { %v1358_v43 = vpack.c.bf16 %v1356_v33, %v1356_v33  ;;  %2078 = vmatprep.subr.bf16.mxu1 %v2285_v15  ;;  %v1850_v33 = vld [vmem:[#allocation7 + $0x30] ss:$0 sm:$0xff] }
0x1255   :  { %2063 = vmatmul.mubr.msk.bf16.vlgmr.msra.gmra.mrb[36].mxu0 %vm264_vm3, %v1358_v43 }
0x1256   :  { %2073 = vmatpush3.bf16.msra.mxu0 %v2124_v34  ;;  %2074 = vmatprep.mubr.msk.bf16.mxu0 %vm2286_vm1, %v2285_v15 }
0x1257   :  { %2086 = vmatprep.subr.bf16.mxu0 %v2285_v15 }
0x125d   :  { %2075 = vmatmul.mubr.msk.bf16.vlgmr.msra.gmra.mrb[40].mxu0 %vm166_vm2, %v1232_v56 }
0x125e   :  { %2094 = vmatprep.mubr.msk.bf16.mxu0 %vm2286_vm1, %v2285_v15  ;;  %2087 = vmatpush3.bf16.msra.mxu0 %v2128_v40 }
0x125f   :  { %2088 = vmatprep.subr.bf16.mxu0 %v2285_v15 }
0x1262   :  { %2089 = vmatpush3.bf16.msra.mxu0 %v2129_v10 }
0x1263   :  { %2090 = vmatprep.subr.bf16.mxu0 %v2285_v15 }
0x1266   :  { %2091 = vmatpush3.bf16.msra.mxu0 %v2130_v31 }
0x1267   :  { %2092 = vmatprep.subr.bf16.mxu0 %v2285_v15 }
0x126a   :  { %2093 = vmatpush3.bf16.msra.mxu0 %v2131_v32 }
0x1324   :  { %v1401_v38 = vpop.f32.mrb[44].mxu1 }
0x1325   :  { %v2058_v39 = vpop.f32.mrb[45].mxu1 }
0x1326   :  { %v1404_v41 = vpop.f32.mrb[46].mxu1 }
0x1327   :  { %v2059_v42 = vpop.f32.mrb[47].mxu1 }
0x1328   :  { %v1449_v44 = vpop.f32.mrb[36].mxu0 }
0x1329   :  { %v1457_v45 = vpack.c.bf16 %v1449_v44, %v1401_v38  ;;  %v2064_v46 = vpop.f32.mrb[37].mxu0 }
0x132a   :  { %v1452_v47 = vpop.f32.mrb[38].mxu0  ;;  %v1854_v46 = vld [vmem:[#allocation7 + $0x38] ss:$0 sm:$0xff] }
0x132b   :  { %v2065_v48 = vpop.f32.mrb[39].mxu0  ;;  %2069 = vmatmul.mubr.msk.bf16.vlgmr.msra.gmra.mrb[48].mxu1 %vm166_vm2, %v1457_v45 }
0x132c   :  { %2082 = vmatprep.mubr.msk.bf16.mxu1 %vm2286_vm1, %v2285_v15  ;;  %2079 = vmatpush3.bf16.msra.mxu1 %v2126_v9 }
0x132d   :  { %2080 = vmatprep.subr.bf16.mxu1 %v2285_v15 }
0x1330   :  { %v1551_v49 = vpop.f32.mrb[40].mxu0 }
0x1331   :  { %v2076_v36 = vpop.f32.mrb[41].mxu0 }
0x1332   :  { %v1554_v50 = vpop.f32.mrb[42].mxu0 }
0x1333   :  { %v2077_v37 = vpop.f32.mrb[43].mxu0 }
0x13fe   :  { %v1501_v51 = vpop.f32.mrb[48].mxu1 }
0x13ff   :  { %v1552_v52 = vadd.f32 %v1551_v49, %v1501_v51  ;;  %v2070_v53 = vpop.f32.mrb[49].mxu1 }
0x1400   :  { %v1504_v54 = vpop.f32.mrb[50].mxu1 }
0x1401   :  { %v1555_v55 = vadd.f32 %v1554_v50, %v1504_v54  ;;  %v2071_v56 = vpop.f32.mrb[51].mxu1  ;;  %v1558_v57 = vadd.f32 %v1552_v52, %v2499_v60 }
0x1403   :  { %v1561_v58 = vsel %vm60_vm0, %v1558_v57, 0.0  ;;  %v1559_v59 = vadd.f32 %v1555_v55, %v2501_v61  ;;  %v2127_v61 = vld [vmem:[#allocation5 + $0x78] sm:$0xff]  }
0x1404   :  { %1562 = vadd.xlane.f32.xlu1 %v1561_v58  ;;  %2081 = vmatpush3.bf16.msra.mxu1 %v2127_v61 }
0x1405   :  { %v1564_v62 = vsel %vm60_vm0, %v1559_v59, 0.0 }
0x1406   :  { %1565 = vadd.xlane.f32.xlu0 %v1564_v62 }
0x1491   :  { %v1563_v63 = vpop.xlane.xlu1 %1562 }
0x1492   :  { %v1567_v0 = vmul.f32 0.03125, %v1563_v63 }
0x1493   :  { %v1566_v1 = vpop.xlane.xlu0 %1565 }
0x1494   :  { %v1569_v3 = vsub.f32 %v1558_v57, %v1567_v0  ;;  %v1568_v4 = vmul.f32 0.03125, %v1566_v1 }
0x1496   :  { %v1570_v5 = vsub.f32 %v1559_v59, %v1568_v4  ;;  %v1571_v6 = vmul.f32 %v1569_v3, %v1569_v3 }
0x1498   :  { %v1573_v7 = vsel %vm60_vm0, %v1571_v6, 0.0  ;;  %v1572_v8 = vmul.f32 %v1570_v5, %v1570_v5 }
0x1499   :  { %1574 = vadd.xlane.f32.xlu0 %v1573_v7 }
0x149a   :  { %v1576_v60 = vsel %vm60_vm0, %v1572_v8, 0.0 }
0x149b   :  { %1577 = vadd.xlane.f32.xlu1 %v1576_v60  ;;  %v1751_v60 = vld [vmem:[#allocation7 + $0x40] sm:$0x3] }
0x149c   :  { %v1781_v9 = vrot.slane %v1751_v60, %v2368_v25  ;;  %v1787_v10 = vrot.slane %v1751_v60, %v2371_v30 }
0x1526   :  { %v1575_v11 = vpop.xlane.xlu0 %1574 }
0x1527   :  { %v1579_v12 = vmul.f32 0.03125, %v1575_v11 }
0x1528   :  { %v1578_v13 = vpop.xlane.xlu1 %1577 }
0x1529   :  { %v1581_v14 = vadd.f32 1e-06, %v1579_v12  ;;  %v1580_v16 = vmul.f32 0.03125, %v1578_v13 }
0x152b   :  { %2176 = vrsqrt.f32 %v1581_v14  ;;  %v1582_v17 = vadd.f32 1e-06, %v1580_v16 }
0x152d   :  { %2178 = vrsqrt.f32 %v1582_v17 }
0x1535   :  { %v2177_v20 = vpop.eup %2176 }
0x1536   :  { %v1585_v21 = vmul.f32 %v2177_v20, %v1569_v3 }
0x1537   :  { %v2179_v22 = vpop.eup %2178 }
0x1538   :  { %v1591_v2 = vmul.f32 %v1590_v19, %v1585_v21  ;;  %v1586_v23 = vmul.f32 %v2179_v22, %v1570_v5 }
0x153a   :  { %v1592_v26 = vmul.f32 %v1590_v19, %v1586_v23  ;;  %v1597_v27 = vadd.f32 %v1596_v24, %v1591_v2 }
0x153c   :  { %v1598_v28 = vadd.f32 %v1596_v24, %v1592_v26 }
0x153e   :  { %v1613_v29 = vpack.c.bf16 %v1598_v28, %v1597_v27 }
0x1540   :  { %2083 = vmatmul.mubr.msk.bf16.vlgmr.msra.gmra.mrb[52].mxu1 %vm60_vm0, %v1613_v29 }
0x1613   :  { %v1667_v34 = vpop.f32.mrb[52].mxu1 }
0x1614   :  { %v1668_v43 = vadd.f32 %v1850_v33, %v1667_v34  ;;  %v2084_v35 = vpop.f32.mrb[53].mxu1 }
0x1615   :  { %v1670_v38 = vpop.f32.mrb[54].mxu1 }
0x1616   :  { %v1671_v39 = vadd.f32 %v1850_v33, %v1670_v38  ;;  %v2085_v41 = vpop.f32.mrb[55].mxu1  ;;  %v1674_v42 = vmax.f32 %v1668_v43, 0.0 }
0x1618   :  { %v1675_v44 = vmax.f32 %v1671_v39, 0.0 }
0x161a   :  { %v1676_v45 = vpack.c.bf16 %v1675_v44, %v1674_v42 }
0x161c   :  { %2095 = vmatmul.mubr.msk.bf16.vlgmr.msra.gmra.mrb[44].mxu0 %vm861_vm5, %v1676_v45 }
0x16ef   :  { %v1742_v47 = vpop.f32.mrb[44].mxu0 }
0x16f0   :  { %v1743_v48 = vadd.f32 %v1854_v46, %v1742_v47  ;;  %v2096_v49 = vpop.f32.mrb[45].mxu0 }
0x16f1   :  { %v1745_v36 = vpop.f32.mrb[46].mxu0 }
0x16f2   :  { %v1746_v15 = vadd.f32 %v1854_v46, %v1745_v36  ;;  %v2097_v50 = vpop.f32.mrb[47].mxu0  ;;  %v1749_v37 = vadd.f32 %v1743_v48, %v1597_v27 }
0x16f4   :  { %v1752_v51 = vsel %vm60_vm0, %v1749_v37, 0.0  ;;  %v1750_v52 = vadd.f32 %v1746_v15, %v1598_v28 }
0x16f5   :  { %1753 = vadd.xlane.f32.xlu0 %v1752_v51 }
0x16f6   :  { %v1755_v53 = vsel %vm60_vm0, %v1750_v52, 0.0 }
0x16f7   :  { %1756 = vadd.xlane.f32.xlu1 %v1755_v53 }
0x1782   :  { %v1754_v54 = vpop.xlane.xlu0 %1753 }
0x1783   :  { %v1758_v55 = vmul.f32 0.03125, %v1754_v54 }
0x1784   :  { %v1757_v56 = vpop.xlane.xlu1 %1756 }
0x1785   :  { %v1760_v57 = vsub.f32 %v1749_v37, %v1758_v55  ;;  %v1759_v58 = vmul.f32 0.03125, %v1757_v56 }
0x1787   :  { %v1761_v59 = vsub.f32 %v1750_v52, %v1759_v58  ;;  %v1762_v62 = vmul.f32 %v1760_v57, %v1760_v57 }
0x1789   :  { %v1764_v63 = vsel %vm60_vm0, %v1762_v62, 0.0  ;;  %v1763_v0 = vmul.f32 %v1761_v59, %v1761_v59 }
0x178a   :  { %1765 = vadd.xlane.f32.xlu0 %v1764_v63 }
0x178b   :  { %v1767_v1 = vsel %vm60_vm0, %v1763_v0, 0.0 }
0x178c   :  { %1768 = vadd.xlane.f32.xlu1 %v1767_v1 }
0x1817   :  { %v1766_v3 = vpop.xlane.xlu0 %1765 }
0x1818   :  { %v1770_v4 = vmul.f32 0.03125, %v1766_v3 }
0x1819   :  { %v1769_v5 = vpop.xlane.xlu1 %1768 }
0x181a   :  { %v1772_v6 = vadd.f32 1e-06, %v1770_v4  ;;  %v1771_v7 = vmul.f32 0.03125, %v1769_v5 }
0x181c   :  { %2180 = vrsqrt.f32 %v1772_v6  ;;  %v1773_v8 = vadd.f32 1e-06, %v1771_v7 }
0x181e   :  { %2182 = vrsqrt.f32 %v1773_v8 }
0x1826   :  { %v2181_v61 = vpop.eup %2180 }
0x1827   :  { %v1776_v40 = vmul.f32 %v2181_v61, %v1760_v57 }
0x1828   :  { %v2183_v11 = vpop.eup %2182 }
0x1829   :  { %v1777_v12 = vmul.f32 %v2183_v11, %v1761_v59  ;;  %v1782_v13 = vmul.f32 %v1781_v9, %v1776_v40 }
0x182b   :  { %v1783_v14 = vmul.f32 %v1781_v9, %v1777_v12  ;;  %v1788_v16 = vadd.f32 %v1787_v10, %v1782_v13 }
0x182d   :  { %v1789_v17 = vadd.f32 %v1787_v10, %v1783_v14  ;;  %1790 = vst.msk [vmem:[#allocation8] sm:$0xff] %vm60_vm0, %v1788_v16 }
0x182f   :  { %1791 = vst.msk [vmem:[#allocation8 + $0x8] sm:$0xff] %vm60_vm0, %v1789_v17 }
0x1830   :  { %2261 = shalt.err (!%p2258_p0)
}
0x1831   :  { %s2262_s4 = scalar_lea.hbm %s2633_s3, 256 }
0x1832   :  { %p2263_p1 = scmp.ne.s32.totalorder %s2633_s3, %s2262_s4  ;;  %p2266_p2 = scmp.lt.u32.totalorder %s2262_s4, %s2633_s3 }
0x1834   :  { %p2268_p3 = pnand %p2266_p2, %p2263_p1 }
0x1836   :  { %2271 = shalt.err (!%p2268_p3)
}
0x1837   :  { %1803 = dma.vmem_to_hbm [thread:$0]  %s1798_s27, 256, %s2633_s3, [#allocation4], %s2282_s1, %s2282_s1, %s2283_s9  }
0x1838   :  { %2276 = dma.done.wait [#allocation4], 256  }
0x1839   :  { %2277 = vsyncadd [#allocation4], 4294967040 }
0x183a   :  { %1807 = vsyncpa [#allocation3], 1 }
0x183b   :  { %1808 = vsyncpa [#allocation6], 1 }
0x183c   :  { %1809 = vsyncpa [#allocation4], 1 }

</bundles_post_ra>
